<compile_context>
chip_gen: v6e
topology: v6e:2x2x1
jax: 0.10.0
libtpu: 0.0.40
codegen_flags: <defaults>
</compile_context>

<pallas_src>
import functools

import jax
import jax.numpy as jnp
from jax.experimental import pallas as pl
from jax.experimental.pallas import tpu as pltpu


def _ffn_kernel_resident(x_ref, w1_ref, b1_ref, w2_ref, b2_ref, o_ref):
    # 1-D grid over row tiles; W1/W2 fully VMEM-resident (constant index_map),
    # so there is no accumulator scratch and o_ref is written directly.
    # x_ref: (tm, C) input dtype; w1_ref: (C, H) bf16; b1_ref: (1, H) f32
    # w2_ref: (H, C) bf16; b2_ref: (1, C) f32; o_ref: (tm, C) out dtype
    x = x_ref[...].astype(jnp.bfloat16)          # in-kernel cast (no extra HBM pass)
    h = jnp.dot(x, w1_ref[...], preferred_element_type=jnp.float32) + b1_ref[...]
    h = jnp.maximum(h, 0.0)
    y = jnp.dot(h.astype(jnp.bfloat16), w2_ref[...],
                preferred_element_type=jnp.float32) + b2_ref[...]
    # TODO(synk): nn.Dropout(0.2) is identity in eval mode; training-mode RNG
    # masking is not reproduced here (could use pltpu.prng_random_bits).
    o_ref[...] = y.astype(o_ref.dtype)


def _ffn_kernel_streamed(x_ref, w1_ref, b1_ref, w2_ref, b2_ref, o_ref, acc_ref):
    # 2-D grid (row tiles, hidden tiles): H is a trailing reduction axis with a
    # f32 VMEM accumulator; W1/W2 arrive as (C, th)/(th, C) slabs.
    j = pl.program_id(1)

    @pl.when(j == 0)
    def _():
        acc_ref[...] = jnp.zeros_like(acc_ref)

    x = x_ref[...].astype(jnp.bfloat16)
    h = jnp.dot(x, w1_ref[...], preferred_element_type=jnp.float32) + b1_ref[...]
    h = jnp.maximum(h, 0.0)
    # ReLU is per-hidden-unit, so summing partial products over H tiles is exact.
    acc_ref[...] += jnp.dot(h.astype(jnp.bfloat16), w2_ref[...],
                            preferred_element_type=jnp.float32)

    @pl.when(j == pl.num_programs(1) - 1)
    def _():
        o_ref[...] = (acc_ref[...] + b2_ref[...]).astype(o_ref.dtype)


def _round_up(a, b):
    return (a + b - 1) // b * b


def _cdiv(a, b):
    return (a + b - 1) // b


def _pick_hidden_tile(H, th):
    """Largest divisor of H that is a multiple of 128 and <= th (lane
    constraint on the (C, th) W1 slab).  Returns H if no such divisor exists
    (e.g. H < 128 or H not a multiple of 128)."""
    best = None
    d = 128
    while d <= min(H, th):
        if H % d == 0:
            best = d
        d += 128
    return best if best is not None else H


@functools.partial(jax.jit, static_argnames=("tm", "th"))
def feed_forward(x, w1, b1, w2, b2, *, tm=512, th=512):
    """y = ReLU(x @ W1 + b1) @ W2 + b2   (eval-mode FeedForward)."""
    B, T, C = x.shape
    H = w1.shape[1]
    M = B * T

    x2d = x.reshape(M, C)

    # bf16 MXU operands; these casts are no-ops if params are stored in bf16.
    w1_bf = w1.astype(jnp.bfloat16)
    w2_bf = w2.astype(jnp.bfloat16)
    b1_2d = b1.reshape(1, H).astype(jnp.float32)
    b2_2d = b2.reshape(1, C).astype(jnp.float32)

    in_item = x.dtype.itemsize
    out_item = x.dtype.itemsize

    # --- Row tile: big tiles amortize ~0.35 us/step pipeline overhead; for
    #     small M, split into two >=16-row tiles so v7x megacore gets 2 steps.
    if M > tm:
        tm_eff = tm
    elif M > 16:
        tm_eff = _round_up(_cdiv(M, 2), 16)
    else:
        tm_eff = _round_up(max(M, 8), 16)
    grid_m = _cdiv(M, tm_eff)      # ragged last tile handled by Pallas masking

    mib = 1024 * 1024

    def _footprint(th_e):
        n_wbuf = 2 if th_e == H else 3                   # Buffered(3) when streamed
        w_bytes = n_wbuf * 2 * (C * th_e) * 2            # W1 + W2 slabs, bf16
        b_bytes = 2 * (th_e + C) * 4
        x_bytes = 2 * tm_eff * C * in_item
        o_bytes = 2 * tm_eff * C * out_item
        h_bytes = tm_eff * th_e * 4                      # f32 hidden intermediate
        acc_bytes = 0 if th_e == H else tm_eff * C * 4   # accumulator scratch
        return w_bytes + b_bytes + x_bytes + o_bytes + h_bytes + acc_bytes

    # --- Resident (weights live in VMEM, fetched once) vs. streamed weights.
    resident = _footprint(H) <= 32 * mib
    th_eff = H if resident else _pick_hidden_tile(H, th)
    if th_eff == H:
        resident = True
        # TODO(synk): if H is huge and not a multiple of 128 this path can
        # exceed the VMEM budget; a padded-H streamed variant would be needed.

    footprint = _footprint(th_eff)
    # Derived limit with headroom; never request all of v7x's 64 MiB VMEM.
    vmem_limit = int(min(48 * mib, max(24 * mib, 2 * footprint)))

    flops = 4 * M * C * H  # two (M,C,H) matmuls, 2 flops/MAC

    if resident:
        bytes_accessed = (M * C * in_item + M * C * out_item
                          + (w1_bf.size + w2_bf.size) * 2       # weights read once
                          + (b1_2d.size + b2_2d.size) * 4)
        out = pl.pallas_call(
            _ffn_kernel_resident,
            out_shape=jax.ShapeDtypeStruct((M, C), x.dtype),
            grid_spec=pltpu.PrefetchScalarGridSpec(
                num_scalar_prefetch=0,
                grid=(grid_m,),
                in_specs=[
                    pl.BlockSpec((tm_eff, C), lambda i: (i, 0)),   # x row tile
                    pl.BlockSpec((C, H), lambda i: (0, 0)),        # W1 (resident)
                    pl.BlockSpec((1, H), lambda i: (0, 0)),        # b1
                    pl.BlockSpec((H, C), lambda i: (0, 0)),        # W2 (resident)
                    pl.BlockSpec((1, C), lambda i: (0, 0)),        # b2
                ],
                out_specs=pl.BlockSpec((tm_eff, C), lambda i: (i, 0)),
            ),
            compiler_params=pltpu.CompilerParams(
                dimension_semantics=("parallel",),
                vmem_limit_bytes=vmem_limit,
            ),
            cost_estimate=pl.CostEstimate(
                flops=flops, transcendentals=0, bytes_accessed=bytes_accessed),
        )(x2d, w1_bf, b1_2d, w2_bf, b2_2d)
    else:
        grid_h = H // th_eff
        bytes_accessed = (M * C * in_item + M * C * out_item
                          + grid_m * (w1_bf.size + w2_bf.size) * 2  # re-streamed per row tile
                          + (b1_2d.size + b2_2d.size) * 4)
        out = pl.pallas_call(
            _ffn_kernel_streamed,
            out_shape=jax.ShapeDtypeStruct((M, C), x.dtype),
            grid_spec=pltpu.PrefetchScalarGridSpec(
                num_scalar_prefetch=0,
                grid=(grid_m, grid_h),
                in_specs=[
                    pl.BlockSpec((tm_eff, C), lambda i, j: (i, 0)),   # x row tile
                    pl.BlockSpec((C, th_eff), lambda i, j: (0, j),    # W1 H-slab
                                 pipeline_mode=pl.Buffered(3)),
                    pl.BlockSpec((1, th_eff), lambda i, j: (0, j)),   # b1 H-slab
                    pl.BlockSpec((th_eff, C), lambda i, j: (j, 0),    # W2 H-slab
                                 pipeline_mode=pl.Buffered(3)),
                    pl.BlockSpec((1, C), lambda i, j: (0, 0)),        # b2
                ],
                out_specs=pl.BlockSpec((tm_eff, C), lambda i, j: (i, 0)),
                scratch_shapes=[pltpu.VMEM((tm_eff, C), jnp.float32)],
            ),
            compiler_params=pltpu.CompilerParams(
                dimension_semantics=("parallel", "arbitrary"),
                vmem_limit_bytes=vmem_limit,
            ),
            cost_estimate=pl.CostEstimate(
                flops=flops, transcendentals=0, bytes_accessed=bytes_accessed),
        )(x2d, w1_bf, b1_2d, w2_bf, b2_2d)

    return out.reshape(B, T, C)


if __name__ == "__main__":
    # Shapes consistent with the module: n_embed = 384, hidden = 4 * n_embed,
    # batch=2, seq=8.
    B, T, C = 2, 8, 384
    H = 4 * C

    key = jax.random.PRNGKey(0)
    kx, kw1, kb1, kw2, kb2 = jax.random.split(key, 5)

    x = jax.random.normal(kx, (B, T, C), dtype=jnp.float32)
    # Deterministic param init (PyTorch-like uniform fan-in scaling).
    w1 = jax.random.uniform(kw1, (C, H), jnp.float32, -1.0, 1.0) / jnp.sqrt(C)
    b1 = jax.random.uniform(kb1, (H,), jnp.float32, -1.0, 1.0) / jnp.sqrt(C)
    w2 = jax.random.uniform(kw2, (H, C), jnp.float32, -1.0, 1.0) / jnp.sqrt(H)
    b2 = jax.random.uniform(kb2, (C,), jnp.float32, -1.0, 1.0) / jnp.sqrt(H)

    # Store weights in bf16 once at "parameter init" (no per-call cast under jit).
    w1_p = w1.astype(jnp.bfloat16)
    w2_p = w2.astype(jnp.bfloat16)

    y = feed_forward(x, w1_p, b1, w2_p, b2)
    jax.block_until_ready(y)

    # f32 reference using the same bf16-stored weights (eval-mode dropout =
    # identity).  Remaining error comes from the in-kernel bf16 casts of x / h.
    w1_f = w1_p.astype(jnp.float32)
    w2_f = w2_p.astype(jnp.float32)
    ref = jnp.maximum(x.reshape(-1, C) @ w1_f + b1, 0.0) @ w2_f + b2
    ref = ref.reshape(B, T, C)
    assert jnp.allclose(y, ref, atol=2e-2, rtol=2e-2), (
        "mismatch vs reference, max err = "
        f"{float(jnp.max(jnp.abs(y - ref)))}")

    print("KERNEL_OK")
</pallas_src>

<mosaic_0001>
module attributes {stable_mosaic.version = 11 : i64} {
  func.func @_ffn_kernel_resident(%arg0: i32, %arg1: memref<16x384xf32, #tpu.memory_space<vmem>>, %arg2: memref<384x1536xbf16, #tpu.memory_space<vmem>>, %arg3: memref<1x1536xf32, #tpu.memory_space<vmem>>, %arg4: memref<1536x384xbf16, #tpu.memory_space<vmem>>, %arg5: memref<1x384xf32, #tpu.memory_space<vmem>>, %arg6: memref<16x384xf32, #tpu.memory_space<vmem>>) attributes {dimension_semantics = [#tpu.dimension_semantics<parallel>], iteration_bounds = array<i64: 1>, scalar_prefetch = 0 : i64, scratch_operands = 0 : i64, tpu.core_type = #tpu.core_type<tc>, window_params = [{transform_indices = @transform_0, window_bounds = array<i64: 16, 384>}, {pipeline_mode = #tpu.pipeline_mode<synchronous>, transform_indices = @transform_1, window_bounds = array<i64: 384, 1536>}, {pipeline_mode = #tpu.pipeline_mode<synchronous>, transform_indices = @transform_2, window_bounds = array<i64: 1, 1536>}, {pipeline_mode = #tpu.pipeline_mode<synchronous>, transform_indices = @transform_3, window_bounds = array<i64: 1536, 384>}, {pipeline_mode = #tpu.pipeline_mode<synchronous>, transform_indices = @transform_4, window_bounds = array<i64: 1, 384>}, {transform_indices = @transform_5, window_bounds = array<i64: 16, 384>}]} {
    %c0 = arith.constant 0 : index
    %c0_0 = arith.constant 0 : index
    %0 = vector.load %arg1[%c0, %c0_0] : memref<16x384xf32, #tpu.memory_space<vmem>>, vector<16x384xf32>
    %1 = arith.truncf %0 : vector<16x384xf32> to vector<16x384xbf16>
    %c0_1 = arith.constant 0 : index
    %c0_2 = arith.constant 0 : index
    %2 = vector.load %arg2[%c0_1, %c0_2] : memref<384x1536xbf16, #tpu.memory_space<vmem>>, vector<384x1536xbf16>
    %cst = arith.constant dense<0.000000e+00> : vector<16x1536xf32>
    %3 = tpu.matmul %1, %2, %cst {dimension_numbers = #tpu.dot_dimension_numbers<[1], [0], [0], [1], [0, 0, 1, 1], [], []>} : vector<16x384xbf16>, vector<384x1536xbf16>, vector<16x1536xf32> -> vector<16x1536xf32>
    %c0_3 = arith.constant 0 : index
    %c0_4 = arith.constant 0 : index
    %4 = vector.load %arg3[%c0_3, %c0_4] : memref<1x1536xf32, #tpu.memory_space<vmem>>, vector<1x1536xf32>
    %5 = vector.broadcast %4 : vector<1x1536xf32> to vector<16x1536xf32>
    %6 = arith.addf %3, %5 : vector<16x1536xf32>
    %cst_5 = arith.constant 0.000000e+00 : f32
    %7 = vector.broadcast %cst_5 : f32 to vector<16x1536xf32>
    %8 = arith.maximumf %6, %7 : vector<16x1536xf32>
    %9 = arith.truncf %8 : vector<16x1536xf32> to vector<16x1536xbf16>
    %c0_6 = arith.constant 0 : index
    %c0_7 = arith.constant 0 : index
    %10 = vector.load %arg4[%c0_6, %c0_7] : memref<1536x384xbf16, #tpu.memory_space<vmem>>, vector<1536x384xbf16>
    %cst_8 = arith.constant dense<0.000000e+00> : vector<16x384xf32>
    %11 = tpu.matmul %9, %10, %cst_8 {dimension_numbers = #tpu.dot_dimension_numbers<[1], [0], [0], [1], [0, 0, 1, 1], [], []>} : vector<16x1536xbf16>, vector<1536x384xbf16>, vector<16x384xf32> -> vector<16x384xf32>
    %c0_9 = arith.constant 0 : index
    %c0_10 = arith.constant 0 : index
    %12 = vector.load %arg5[%c0_9, %c0_10] : memref<1x384xf32, #tpu.memory_space<vmem>>, vector<1x384xf32>
    %13 = vector.broadcast %12 : vector<1x384xf32> to vector<16x384xf32>
    %14 = arith.addf %11, %13 : vector<16x384xf32>
    %c0_11 = arith.constant 0 : index
    %c0_12 = arith.constant 0 : index
    %15 = vector.load %arg6[%c0_11, %c0_12] : memref<16x384xf32, #tpu.memory_space<vmem>>, vector<16x384xf32>
    tpu.vector_store %arg6[%c0_11, %c0_12], %14 {strides = array<i32>} : memref<16x384xf32, #tpu.memory_space<vmem>>, vector<16x384xf32>,
    return
  }
  func.func @transform_0(%arg0: i32) -> (i32, i32) {
    %c0_i32 = arith.constant 0 : i32
    %c0_i32_0 = arith.constant 0 : i32
    return %arg0, %c0_i32 : i32, i32
  }
  func.func @transform_1(%arg0: i32) -> (i32, i32) {
    %c0_i32 = arith.constant 0 : i32
    %c0_i32_0 = arith.constant 0 : i32
    %c0_i32_1 = arith.constant 0 : i32
    return %c0_i32, %c0_i32_0 : i32, i32
  }
  func.func @transform_2(%arg0: i32) -> (i32, i32) {
    %c0_i32 = arith.constant 0 : i32
    %c0_i32_0 = arith.constant 0 : i32
    %c0_i32_1 = arith.constant 0 : i32
    return %c0_i32, %c0_i32_0 : i32, i32
  }
  func.func @transform_3(%arg0: i32) -> (i32, i32) {
    %c0_i32 = arith.constant 0 : i32
    %c0_i32_0 = arith.constant 0 : i32
    %c0_i32_1 = arith.constant 0 : i32
    return %c0_i32, %c0_i32_0 : i32, i32
  }
  func.func @transform_4(%arg0: i32) -> (i32, i32) {
    %c0_i32 = arith.constant 0 : i32
    %c0_i32_0 = arith.constant 0 : i32
    %c0_i32_1 = arith.constant 0 : i32
    return %c0_i32, %c0_i32_0 : i32, i32
  }
  func.func @transform_5(%arg0: i32) -> (i32, i32) {
    %c0_i32 = arith.constant 0 : i32
    %c0_i32_0 = arith.constant 0 : i32
    return %arg0, %c0_i32 : i32, i32
  }
}

</mosaic_0001>

<bundles_post_ra>
// kernel: feed_forward.1
= control target key start
LH: loop header
LB: loop body
LE: loop exit
PB: predicated region body
PF: predicated region fallthrough
CT: control target
= control target key end

     0   :  { %10 = vsyncpa [#allocation3], 0  ;;  %s6732_s0 = inlined_call_operand.hbm [shape: f32[16,384], index: 0, kind: input, shape index: {}]   ;;  %s6733_s1 = inlined_call_operand.hbm [shape: bf16[384,1536], index: 1, kind: input, shape index: {}]   ;;  %s6734_s2 = inlined_call_operand.vmem [shape: f32[1,1536], index: 2, kind: input, shape index: {}]   ;;  %s6735_s3 = inlined_call_operand.hbm [shape: bf16[1536,384], index: 3, kind: input, shape index: {}]   ;;  %s6736_s4 = inlined_call_operand.vmem [shape: f32[1,384], index: 4, kind: input, shape index: {}]   ;;  %s6737_s5 = inlined_call_operand.hbm [shape: f32[16,384], index: 5, kind: output, shape index: {}]  }
   0x1   :  { %11 = vsyncpa [#allocation6], 0 }
   0x2   :  { %12 = vsyncpa [#allocation4], 0  ;;  %s6503_s18 = smov [#allocation5]  }
   0x3   :  { %s30_s19 = sshll.u32 %s6503_s18, 4  ;;  %s31_s19 = int_to_ptr.vmem [resolvable:$true] %s30_s19 }
   0x4   :  { %s6425_s20 = scalar_lea.vmem %s31_s19, 36864  ;;  %p6430_p1 = scmp.lt.s32.totalorder %s31_s19, %s31_s19 }
   0x5   :  { %p6426_p0 = scmp.ne.s32.totalorder %s31_s19, %s6425_s20  ;;  %p6431_p2 = scmp.lt.s32.totalorder %s6425_s20, %s6425_s20 }
   0x7   :  { %p6432_p3 = por %p6431_p2, %p6430_p1 }
   0x9   :  { %p6433_p4 = pnand %p6432_p3, %p6426_p0 }
   0xb   :  { %6436 = shalt.err (!%p6433_p4)
}
   0xc   :  { %s6504_s21 = smov 768   ;;  %s6505_s22 = smov 48  }
   0xd   :  { %36 = dma.hbm_to_vmem [thread:$0]  %s6733_s1, 36864, %s31_s19, [#allocation6], %s6504_s21, %s6504_s21, %s6505_s22  }
   0xe   :  { %s6506_s25 = smov [#allocation2]  }
   0xf   :  { %s18_s26 = sshll.u32 %s6506_s25, 4  ;;  %s19_s26 = int_to_ptr.vmem [resolvable:$true] %s18_s26 }
  0x10   :  { %s6445_s27 = scalar_lea.vmem %s19_s26, 768  ;;  %p6450_p6 = scmp.lt.s32.totalorder %s19_s26, %s19_s26 }
  0x11   :  { %p6446_p5 = scmp.ne.s32.totalorder %s19_s26, %s6445_s27  ;;  %p6451_p7 = scmp.lt.s32.totalorder %s6445_s27, %s6445_s27 }
  0x13   :  { %p6452_p8 = por %p6451_p7, %p6450_p6 }
  0x15   :  { %p6453_p9 = pnand %p6452_p8, %p6446_p5 }
  0x17   :  { %6456 = shalt.err (!%p6453_p9)
}
  0x18   :  { %s6507_s28 = smov 384   ;;  %s6508_s29 = smov 24  }
  0x19   :  { %24 = dma.hbm_to_vmem [thread:$0]  %s6732_s0, 768, %s19_s26, [#allocation3], %s6507_s28, %s6507_s28, %s6508_s29  }
  0x1a   :  { %s6509_s1 = smov [#allocation7]  }
  0x1b   :  { %s44_s7 = sshll.u32 %s6509_s1, 4  ;;  %s45_s7 = int_to_ptr.vmem [resolvable:$true] %s44_s7 }
  0x1c   :  { %s6465_s8 = scalar_lea.vmem %s45_s7, 36864  ;;  %p6470_p11 = scmp.lt.s32.totalorder %s45_s7, %s45_s7 }
  0x1d   :  { %p6466_p10 = scmp.ne.s32.totalorder %s45_s7, %s6465_s8  ;;  %p6471_p12 = scmp.lt.s32.totalorder %s6465_s8, %s6465_s8 }
  0x1f   :  { %p6472_p13 = por %p6471_p12, %p6470_p11 }
  0x21   :  { %p6473_p0 = pnand %p6472_p13, %p6466_p10 }
  0x23   :  { %6476 = shalt.err (!%p6473_p0)
}
  0x24   :  { %s6510_s9 = smov 192   ;;  %s6511_s10 = smov 12  }
  0x25   :  { %50 = dma.hbm_to_vmem [thread:$0]  %s6735_s3, 36864, %s45_s7, [#allocation6], %s6510_s9, %s6510_s9, %s6511_s10  }
  0x26   :  { %6497 = dma.done.wait [#allocation3], 768  }
  0x27   :  { %6498 = vsyncadd [#allocation3], 4294966528 }
  0x28   :  { %6499 = dma.done.wait [#allocation6], 73728  }
  0x29   :  { %6500 = vsyncadd [#allocation6], 4294893568  ;;  %v6512_v0 = vmov 0   ;;  %v5600_v1 = vld [vmem:[#allocation5 + $0x2a4] ss:$48 sps:$4 sm:$0xff]   ;;  %v68_v34 = vld [vmem:[#allocation2 + $0x28] sm:$0xff] }
  0x2a   :  { %1939 = vmatprep.mubr.bf16.mxu1 %v6512_v0  ;;  %v5602_v2 = vld [vmem:[#allocation5 + $0x8a4] ss:$48 sps:$4 sm:$0xff]   ;;  %1864 = vmatprep.subr.bf16.mxu0 %v5600_v1  ;;  %v5604_v3 = vld [vmem:[#allocation5 + $0x2a0] ss:$48 sps:$4 sm:$0xff]   ;;  %v5652_v36 = vld [vmem:[#allocation5 + $0x2ac] ss:$48 sps:$4 sm:$0xff]  }
  0x2b   :  { %v5605_v4 = vld [vmem:[#allocation5 + $0x8a0] ss:$48 sps:$4 sm:$0xff]   ;;  %1907 = vmatprep.subr.bf16.mxu1 %v5602_v2  ;;  %v5606_v5 = vld [vmem:[#allocation5 + $0x244] ss:$48 sps:$4 sm:$0xff]   ;;  %1865 = vmatpush1.bf16.msra.mxu0 %v5604_v3  ;;  %v5650_v38 = vld [vmem:[#allocation5 + $0x2a8] ss:$48 sps:$4 sm:$0xff]  }
  0x2c   :  { %1908 = vmatpush1.bf16.msra.mxu1 %v5605_v4  ;;  %v5608_v6 = vld [vmem:[#allocation5 + $0x844] ss:$48 sps:$4 sm:$0xff]   ;;  %v5610_v7 = vld [vmem:[#allocation5 + $0x240] ss:$48 sps:$4 sm:$0xff]   ;;  %1866 = vmatprep.subr.bf16.mxu0 %v5606_v5  ;;  %v5658_v41 = vld [vmem:[#allocation5 + $0x24c] ss:$48 sps:$4 sm:$0xff]  }
  0x2d   :  { %v5611_v8 = vld [vmem:[#allocation5 + $0x840] ss:$48 sps:$4 sm:$0xff]   ;;  %1909 = vmatprep.subr.bf16.mxu1 %v5608_v6  ;;  %v5612_v9 = vld [vmem:[#allocation5 + $0x1e4] ss:$48 sps:$4 sm:$0xff]   ;;  %v5656_v42 = vld [vmem:[#allocation5 + $0x248] ss:$48 sps:$4 sm:$0xff]  }
  0x2e   :  { %v5614_v10 = vld [vmem:[#allocation5 + $0x7e4] ss:$48 sps:$4 sm:$0xff]   ;;  %v5616_v11 = vld [vmem:[#allocation5 + $0x1e0] ss:$48 sps:$4 sm:$0xff]   ;;  %v5664_v45 = vld [vmem:[#allocation5 + $0x1ec] ss:$48 sps:$4 sm:$0xff]  }
  0x2f   :  { %v5617_v12 = vld [vmem:[#allocation5 + $0x7e0] ss:$48 sps:$4 sm:$0xff]   ;;  %1867 = vmatpush1.bf16.msra.mxu0 %v5610_v7  ;;  %v5618_v13 = vld [vmem:[#allocation5 + $0x184] ss:$48 sps:$4 sm:$0xff]   ;;  %v5662_v46 = vld [vmem:[#allocation5 + $0x1e8] ss:$48 sps:$4 sm:$0xff]  }
  0x30   :  { %1910 = vmatpush1.bf16.msra.mxu1 %v5611_v8  ;;  %1868 = vmatprep.subr.bf16.mxu0 %v5612_v9  ;;  %v5620_v14 = vld [vmem:[#allocation5 + $0x784] ss:$48 sps:$4 sm:$0xff]   ;;  %v5622_v15 = vld [vmem:[#allocation5 + $0x180] ss:$48 sps:$4 sm:$0xff]   ;;  %v5670_v49 = vld [vmem:[#allocation5 + $0x18c] ss:$48 sps:$4 sm:$0xff]  }
  0x31   :  { %1911 = vmatprep.subr.bf16.mxu1 %v5614_v10  ;;  %v5623_v16 = vld [vmem:[#allocation5 + $0x780] ss:$48 sps:$4 sm:$0xff]   ;;  %v5624_v17 = vld [vmem:[#allocation5 + $0x124] ss:$48 sps:$4 sm:$0xff]   ;;  %v64_v50 = vld [vmem:[#allocation2 + $0x8] sm:$0xff] }
  0x32   :  { %v5626_v18 = vld [vmem:[#allocation5 + $0x724] ss:$48 sps:$4 sm:$0xff]   ;;  %v5628_v19 = vld [vmem:[#allocation5 + $0x120] ss:$48 sps:$4 sm:$0xff]   ;;  %v5668_v52 = vld [vmem:[#allocation5 + $0x188] ss:$48 sps:$4 sm:$0xff]  }
  0x33   :  { %1869 = vmatpush1.bf16.msra.mxu0 %v5616_v11  ;;  %v5629_v20 = vld [vmem:[#allocation5 + $0x720] ss:$48 sps:$4 sm:$0xff]   ;;  %v5630_v21 = vld [vmem:[#allocation5 + $0xc4] ss:$48 sps:$4 sm:$0xff]   ;;  %v5676_v56 = vld [vmem:[#allocation5 + $0x12c] ss:$48 sps:$4 sm:$0xff]  }
  0x34   :  { %1912 = vmatpush1.bf16.msra.mxu1 %v5617_v12  ;;  %1870 = vmatprep.subr.bf16.mxu0 %v5618_v13  ;;  %v5632_v22 = vld [vmem:[#allocation5 + $0x6c4] ss:$48 sps:$4 sm:$0xff]   ;;  %v5634_v23 = vld [vmem:[#allocation5 + $0xc0] ss:$48 sps:$4 sm:$0xff]   ;;  %v5674_v57 = vld [vmem:[#allocation5 + $0x128] ss:$48 sps:$4 sm:$0xff]  }
  0x35   :  { %1913 = vmatprep.subr.bf16.mxu1 %v5620_v14  ;;  %v5635_v24 = vld [vmem:[#allocation5 + $0x6c0] ss:$48 sps:$4 sm:$0xff]   ;;  %v5636_v25 = vld [vmem:[#allocation5 + $0x64] ss:$48 sps:$4 sm:$0xff]   ;;  %v5682_v60 = vld [vmem:[#allocation5 + $0xcc] ss:$48 sps:$4 sm:$0xff]  }
  0x36   :  { %v5638_v26 = vld [vmem:[#allocation5 + $0x664] ss:$48 sps:$4 sm:$0xff]   ;;  %v5640_v27 = vld [vmem:[#allocation5 + $0x60] ss:$48 sps:$4 sm:$0xff]   ;;  %v5680_v61 = vld [vmem:[#allocation5 + $0xc8] ss:$48 sps:$4 sm:$0xff]  }
  0x37   :  { %1871 = vmatpush1.bf16.msra.mxu0 %v5622_v15  ;;  %v5641_v28 = vld [vmem:[#allocation5 + $0x660] ss:$48 sps:$4 sm:$0xff]   ;;  %v5642_v29 = vld [vmem:[#allocation5 + $0x4] ss:$48 sps:$4 sm:$0xff]   ;;  %v5688_v1 = vld [vmem:[#allocation5 + $0x6c] ss:$48 sps:$4 sm:$0xff]  }
  0x38   :  { %1914 = vmatpush1.bf16.msra.mxu1 %v5623_v16  ;;  %1872 = vmatprep.subr.bf16.mxu0 %v5624_v17  ;;  %v5644_v30 = vld [vmem:[#allocation5 + $0x604] ss:$48 sps:$4 sm:$0xff]   ;;  %v5646_v31 = vld [vmem:[#allocation5] ss:$48 sps:$4 sm:$0xff]   ;;  %v5686_v2 = vld [vmem:[#allocation5 + $0x68] ss:$48 sps:$4 sm:$0xff]  }
  0x39   :  { %1915 = vmatprep.subr.bf16.mxu1 %v5626_v18  ;;  %v5647_v32 = vld [vmem:[#allocation5 + $0x600] ss:$48 sps:$4 sm:$0xff]   ;;  %v5648_v35 = vld [vmem:[#allocation5 + $0x5a4] ss:$48 sps:$4 sm:$0xff]   ;;  %v5694_v5 = vld [vmem:[#allocation5 + $0xc] ss:$48 sps:$4 sm:$0xff]  }
  0x3a   :  { %v65_v33 = vld [vmem:[#allocation2 + $0x10] sm:$0xff]  ;;  %v67_v51 = vld [vmem:[#allocation2 + $0x20] sm:$0xff]  ;;  %v5692_v6 = vld [vmem:[#allocation5 + $0x8] ss:$48 sps:$4 sm:$0xff]  }
  0x3b   :  { %1873 = vmatpush1.bf16.msra.mxu0 %v5628_v19  ;;  %v6557_v37 = vpack.c.bf16 %v68_v34, %v65_v33  ;;  %v5653_v39 = vld [vmem:[#allocation5 + $0x5a0] ss:$48 sps:$4 sm:$0xff]   ;;  %v5654_v40 = vld [vmem:[#allocation5 + $0x544] ss:$48 sps:$4 sm:$0xff]   ;;  %v6560_v54 = vpack.c.bf16 %v67_v51, %v64_v50  ;;  %v66_v9 = vld [vmem:[#allocation2 + $0x18] sm:$0xff] }
  0x3c   :  { %1916 = vmatpush1.bf16.msra.mxu1 %v5629_v20  ;;  %1874 = vmatprep.subr.bf16.mxu0 %v5630_v21  ;;  %v5659_v43 = vld [vmem:[#allocation5 + $0x540] ss:$48 sps:$4 sm:$0xff]   ;;  %v5660_v44 = vld [vmem:[#allocation5 + $0x4e4] ss:$48 sps:$4 sm:$0xff]   ;;  %v5698_v10 = vld [vmem:[#allocation5 + $0x5ac] ss:$48 sps:$4 sm:$0xff]  }
  0x3d   :  { %1917 = vmatprep.subr.bf16.mxu1 %v5632_v22  ;;  %v5665_v47 = vld [vmem:[#allocation5 + $0x4e0] ss:$48 sps:$4 sm:$0xff]   ;;  %v5666_v48 = vld [vmem:[#allocation5 + $0x484] ss:$48 sps:$4 sm:$0xff]   ;;  %1896 = vmatprep.mubr.bf16.mxu0 %v6560_v54  ;;  %v5701_v11 = vld [vmem:[#allocation5 + $0x8ac] ss:$48 sps:$4 sm:$0xff]  }
  0x3e   :  { %v5671_v53 = vld [vmem:[#allocation5 + $0x480] ss:$48 sps:$4 sm:$0xff]   ;;  %v5672_v55 = vld [vmem:[#allocation5 + $0x424] ss:$48 sps:$4 sm:$0xff]   ;;  %v5696_v13 = vld [vmem:[#allocation5 + $0x5a8] ss:$48 sps:$4 sm:$0xff]  }
  0x3f   :  { %1875 = vmatpush1.bf16.msra.mxu0 %v5634_v23  ;;  %v5677_v58 = vld [vmem:[#allocation5 + $0x420] ss:$48 sps:$4 sm:$0xff]   ;;  %v5678_v59 = vld [vmem:[#allocation5 + $0x3c4] ss:$48 sps:$4 sm:$0xff]   ;;  %v5699_v14 = vld [vmem:[#allocation5 + $0x8a8] ss:$48 sps:$4 sm:$0xff]  }
  0x40   :  { %1918 = vmatpush1.bf16.msra.mxu1 %v5635_v24  ;;  %1876 = vmatprep.subr.bf16.mxu0 %v5636_v25  ;;  %v5683_v62 = vld [vmem:[#allocation5 + $0x3c0] ss:$48 sps:$4 sm:$0xff]   ;;  %v5684_v63 = vld [vmem:[#allocation5 + $0x364] ss:$48 sps:$4 sm:$0xff]   ;;  %v5704_v15 = vld [vmem:[#allocation5 + $0x54c] ss:$48 sps:$4 sm:$0xff]  }
  0x41   :  { %1919 = vmatprep.subr.bf16.mxu1 %v5638_v26  ;;  %v5689_v3 = vld [vmem:[#allocation5 + $0x360] ss:$48 sps:$4 sm:$0xff]   ;;  %v5690_v4 = vld [vmem:[#allocation5 + $0x304] ss:$48 sps:$4 sm:$0xff]   ;;  %v5707_v16 = vld [vmem:[#allocation5 + $0x84c] ss:$48 sps:$4 sm:$0xff]  }
  0x42   :  { %v5695_v7 = vld [vmem:[#allocation5 + $0x300] ss:$48 sps:$4 sm:$0xff]   ;;  %v5702_v17 = vld [vmem:[#allocation5 + $0x548] ss:$48 sps:$4 sm:$0xff]   ;;  %v5710_v19 = vld [vmem:[#allocation5 + $0x4ec] ss:$48 sps:$4 sm:$0xff]  }
  0x43   :  { %1877 = vmatpush1.bf16.msra.mxu0 %v5640_v27  ;;  %v63_v8 = vld [vmem:[#allocation2] sm:$0xff]  ;;  %v5705_v18 = vld [vmem:[#allocation5 + $0x848] ss:$48 sps:$4 sm:$0xff]   ;;  %v5713_v20 = vld [vmem:[#allocation5 + $0x7ec] ss:$48 sps:$4 sm:$0xff]  }
  0x44   :  { %1920 = vmatpush1.bf16.msra.mxu1 %v5641_v28  ;;  %1878 = vmatprep.subr.bf16.mxu0 %v5642_v29  ;;  %v6564_v12 = vpack.c.bf16 %v66_v9, %v63_v8  ;;  %v5708_v21 = vld [vmem:[#allocation5 + $0x4e8] ss:$48 sps:$4 sm:$0xff]   ;;  %v5716_v23 = vld [vmem:[#allocation5 + $0x48c] ss:$48 sps:$4 sm:$0xff]   ;;  %v5750_v50 = vld [vmem:[#allocation5 + $0x250] ss:$48 sps:$4 sm:$0xff]  }
  0x45   :  { %1921 = vmatprep.subr.bf16.mxu1 %v5644_v30  ;;  %v5711_v22 = vld [vmem:[#allocation5 + $0x7e8] ss:$48 sps:$4 sm:$0xff]   ;;  %v5719_v24 = vld [vmem:[#allocation5 + $0x78c] ss:$48 sps:$4 sm:$0xff]   ;;  %v5753_v51 = vld [vmem:[#allocation5 + $0x850] ss:$48 sps:$4 sm:$0xff]  }
  0x46   :  { %v5714_v25 = vld [vmem:[#allocation5 + $0x488] ss:$48 sps:$4 sm:$0xff]   ;;  %v5722_v27 = vld [vmem:[#allocation5 + $0x42c] ss:$48 sps:$4 sm:$0xff]   ;;  %v5780_v8 = vld [vmem:[#allocation5 + $0x70] ss:$48 sps:$4 sm:$0xff]  }
  0x47   :  { %1879 = vmatpush1.bf16.msra.mxu0 %v5646_v31  ;;  %v5717_v26 = vld [vmem:[#allocation5 + $0x788] ss:$48 sps:$4 sm:$0xff]   ;;  %v5725_v28 = vld [vmem:[#allocation5 + $0x72c] ss:$48 sps:$4 sm:$0xff]   ;;  %v5783_v9 = vld [vmem:[#allocation5 + $0x670] ss:$48 sps:$4 sm:$0xff]  }
  0x48   :  { %1922 = vmatpush1.bf16.msra.mxu1 %v5647_v32  ;;  %1880 = vmatprep.subr.bf16.mxu0 %v5648_v35  ;;  %v5720_v29 = vld [vmem:[#allocation5 + $0x428] ss:$48 sps:$4 sm:$0xff]   ;;  %v5728_v31 = vld [vmem:[#allocation5 + $0x3cc] ss:$48 sps:$4 sm:$0xff]  }
  0x49   :  { %1950 = vmatprep.subr.bf16.mxu1 %v5652_v36  ;;  %v5723_v30 = vld [vmem:[#allocation5 + $0x728] ss:$48 sps:$4 sm:$0xff]   ;;  %v5731_v32 = vld [vmem:[#allocation5 + $0x6cc] ss:$48 sps:$4 sm:$0xff]  }
  0x4a   :  { %v5726_v33 = vld [vmem:[#allocation5 + $0x3c8] ss:$48 sps:$4 sm:$0xff]   ;;  %v5734_v35 = vld [vmem:[#allocation5 + $0x36c] ss:$48 sps:$4 sm:$0xff]  }
  0x4b   :  { %1940 = vmatmul.mubr.bf16.vlgmr.msra.gmra.mxu1 %v6557_v37  ;;  %1881 = vmatpush2.bf16.msra.mxu0 %v5653_v39  ;;  %v5729_v34 = vld [vmem:[#allocation5 + $0x6c8] ss:$48 sps:$4 sm:$0xff]   ;;  %v5737_v36 = vld [vmem:[#allocation5 + $0x66c] ss:$48 sps:$4 sm:$0xff]  }
  0x4c   :  { %1951 = vmatpush1.bf16.msra.mxu1 %v5650_v38  ;;  %1882 = vmatprep.subr.bf16.mxu0 %v5654_v40  ;;  %v5732_v38 = vld [vmem:[#allocation5 + $0x368] ss:$48 sps:$4 sm:$0xff]   ;;  %v5740_v40 = vld [vmem:[#allocation5 + $0x30c] ss:$48 sps:$4 sm:$0xff]  }
  0x4d   :  { %1952 = vmatprep.subr.bf16.mxu1 %v5658_v41  ;;  %1982 = vmatprep.mubr.bf16.mxu1 %v6560_v54  ;;  %v5735_v39 = vld [vmem:[#allocation5 + $0x668] ss:$48 sps:$4 sm:$0xff]   ;;  %v5743_v41 = vld [vmem:[#allocation5 + $0x60c] ss:$48 sps:$4 sm:$0xff]  }
  0x4f   :  { %1883 = vmatpush2.bf16.msra.mxu0 %v5659_v43  ;;  %v5741_v43 = vld [vmem:[#allocation5 + $0x608] ss:$48 sps:$4 sm:$0xff]  }
  0x50   :  { %1953 = vmatpush1.bf16.msra.mxu1 %v5656_v42  ;;  %1884 = vmatprep.subr.bf16.mxu0 %v5660_v44  ;;  %v5738_v42 = vld [vmem:[#allocation5 + $0x308] ss:$48 sps:$4 sm:$0xff]   ;;  %v5746_v44 = vld [vmem:[#allocation5 + $0x2b4] ss:$48 sps:$4 sm:$0xff]  }
  0x51   :  { %1954 = vmatprep.subr.bf16.mxu1 %v5664_v45  ;;  %v5749_v45 = vld [vmem:[#allocation5 + $0x8b4] ss:$48 sps:$4 sm:$0xff]  }
  0x53   :  { %1885 = vmatpush2.bf16.msra.mxu0 %v5665_v47  ;;  %v5747_v47 = vld [vmem:[#allocation5 + $0x8b0] ss:$48 sps:$4 sm:$0xff]  }
  0x54   :  { %1955 = vmatpush1.bf16.msra.mxu1 %v5662_v46  ;;  %1886 = vmatprep.subr.bf16.mxu0 %v5666_v48  ;;  %v5744_v46 = vld [vmem:[#allocation5 + $0x2b0] ss:$48 sps:$4 sm:$0xff]   ;;  %v5752_v48 = vld [vmem:[#allocation5 + $0x254] ss:$48 sps:$4 sm:$0xff]  }
  0x55   :  { %1956 = vmatprep.subr.bf16.mxu1 %v5670_v49  ;;  %v5755_v49 = vld [vmem:[#allocation5 + $0x854] ss:$48 sps:$4 sm:$0xff]  }
  0x57   :  { %1887 = vmatpush2.bf16.msra.mxu0 %v5671_v53  ;;  %v5761_v53 = vld [vmem:[#allocation5 + $0x7f4] ss:$48 sps:$4 sm:$0xff]  }
  0x58   :  { %1957 = vmatpush1.bf16.msra.mxu1 %v5668_v52  ;;  %1888 = vmatprep.subr.bf16.mxu0 %v5672_v55  ;;  %v5758_v52 = vld [vmem:[#allocation5 + $0x1f4] ss:$48 sps:$4 sm:$0xff]   ;;  %v5756_v55 = vld [vmem:[#allocation5 + $0x1f0] ss:$48 sps:$4 sm:$0xff]  }
  0x59   :  { %1958 = vmatprep.subr.bf16.mxu1 %v5676_v56  ;;  %v5759_v56 = vld [vmem:[#allocation5 + $0x7f0] ss:$48 sps:$4 sm:$0xff]  }
  0x5b   :  { %1889 = vmatpush2.bf16.msra.mxu0 %v5677_v58  ;;  %v5767_v58 = vld [vmem:[#allocation5 + $0x794] ss:$48 sps:$4 sm:$0xff]  }
  0x5c   :  { %1959 = vmatpush1.bf16.msra.mxu1 %v5674_v57  ;;  %1890 = vmatprep.subr.bf16.mxu0 %v5678_v59  ;;  %v5764_v57 = vld [vmem:[#allocation5 + $0x194] ss:$48 sps:$4 sm:$0xff]   ;;  %v5762_v59 = vld [vmem:[#allocation5 + $0x190] ss:$48 sps:$4 sm:$0xff]  }
  0x5d   :  { %1960 = vmatprep.subr.bf16.mxu1 %v5682_v60  ;;  %v5765_v60 = vld [vmem:[#allocation5 + $0x790] ss:$48 sps:$4 sm:$0xff]  }
  0x5f   :  { %1891 = vmatpush2.bf16.msra.mxu0 %v5683_v62  ;;  %v5773_v62 = vld [vmem:[#allocation5 + $0x734] ss:$48 sps:$4 sm:$0xff]  }
  0x60   :  { %1961 = vmatpush1.bf16.msra.mxu1 %v5680_v61  ;;  %1892 = vmatprep.subr.bf16.mxu0 %v5684_v63  ;;  %v5770_v61 = vld [vmem:[#allocation5 + $0x134] ss:$48 sps:$4 sm:$0xff]   ;;  %v5768_v63 = vld [vmem:[#allocation5 + $0x130] ss:$48 sps:$4 sm:$0xff]  }
  0x61   :  { %1962 = vmatprep.subr.bf16.mxu1 %v5688_v1  ;;  %v5771_v1 = vld [vmem:[#allocation5 + $0x730] ss:$48 sps:$4 sm:$0xff]  }
  0x63   :  { %1893 = vmatpush2.bf16.msra.mxu0 %v5689_v3  ;;  %v5779_v3 = vld [vmem:[#allocation5 + $0x6d4] ss:$48 sps:$4 sm:$0xff]  }
  0x64   :  { %1963 = vmatpush1.bf16.msra.mxu1 %v5686_v2  ;;  %1894 = vmatprep.subr.bf16.mxu0 %v5690_v4  ;;  %v5776_v2 = vld [vmem:[#allocation5 + $0xd4] ss:$48 sps:$4 sm:$0xff]   ;;  %v5774_v4 = vld [vmem:[#allocation5 + $0xd0] ss:$48 sps:$4 sm:$0xff]  }
  0x65   :  { %1964 = vmatprep.subr.bf16.mxu1 %v5694_v5  ;;  %v5777_v5 = vld [vmem:[#allocation5 + $0x6d0] ss:$48 sps:$4 sm:$0xff]  }
  0x67   :  { %1895 = vmatpush2.bf16.msra.mxu0 %v5695_v7  ;;  %v5785_v7 = vld [vmem:[#allocation5 + $0x674] ss:$48 sps:$4 sm:$0xff]  }
  0x68   :  { %1965 = vmatpush1.bf16.msra.mxu1 %v5692_v6  ;;  %1993 = vmatprep.subr.bf16.mxu0 %v5701_v11  ;;  %v5782_v6 = vld [vmem:[#allocation5 + $0x74] ss:$48 sps:$4 sm:$0xff]  }
  0x69   :  { %1966 = vmatprep.subr.bf16.mxu1 %v5698_v10  ;;  %v5788_v10 = vld [vmem:[#allocation5 + $0x14] ss:$48 sps:$4 sm:$0xff]  }
  0x6a   :  { %1897 = vmatmul.mubr.bf16.vlgmr.msra.gmra.mxu0 %v6564_v12  ;;  %v5791_v11 = vld [vmem:[#allocation5 + $0x614] ss:$48 sps:$4 sm:$0xff]  }
  0x6b   :  { %1994 = vmatpush1.bf16.msra.mxu0 %v5699_v14  ;;  %2025 = vmatprep.mubr.bf16.mxu0 %v6512_v0  ;;  %v5789_v14 = vld [vmem:[#allocation5 + $0x610] ss:$48 sps:$4 sm:$0xff]  }
  0x6c   :  { %1967 = vmatpush2.bf16.msra.mxu1 %v5696_v13  ;;  %1995 = vmatprep.subr.bf16.mxu0 %v5707_v16  ;;  %v5786_v13 = vld [vmem:[#allocation5 + $0x10] ss:$48 sps:$4 sm:$0xff]   ;;  %v5797_v16 = vld [vmem:[#allocation5 + $0x2bc] ss:$48 sps:$4 sm:$0xff]  }
  0x6d   :  { %1968 = vmatprep.subr.bf16.mxu1 %v5704_v15  ;;  %v5794_v15 = vld [vmem:[#allocation5 + $0x5b4] ss:$48 sps:$4 sm:$0xff]  }
  0x6f   :  { %1996 = vmatpush1.bf16.msra.mxu0 %v5705_v18  ;;  %v5795_v18 = vld [vmem:[#allocation5 + $0x2b8] ss:$48 sps:$4 sm:$0xff]  }
  0x70   :  { %1969 = vmatpush2.bf16.msra.mxu1 %v5702_v17  ;;  %1997 = vmatprep.subr.bf16.mxu0 %v5713_v20  ;;  %v5792_v17 = vld [vmem:[#allocation5 + $0x5b0] ss:$48 sps:$4 sm:$0xff]   ;;  %v5803_v20 = vld [vmem:[#allocation5 + $0x25c] ss:$48 sps:$4 sm:$0xff]  }
  0x71   :  { %1970 = vmatprep.subr.bf16.mxu1 %v5710_v19  ;;  %v5800_v19 = vld [vmem:[#allocation5 + $0x554] ss:$48 sps:$4 sm:$0xff]  }
  0x73   :  { %1998 = vmatpush1.bf16.msra.mxu0 %v5711_v22  ;;  %v5801_v22 = vld [vmem:[#allocation5 + $0x258] ss:$48 sps:$4 sm:$0xff]  }
  0x74   :  { %1971 = vmatpush2.bf16.msra.mxu1 %v5708_v21  ;;  %1999 = vmatprep.subr.bf16.mxu0 %v5719_v24  ;;  %v5798_v21 = vld [vmem:[#allocation5 + $0x550] ss:$48 sps:$4 sm:$0xff]   ;;  %v5809_v24 = vld [vmem:[#allocation5 + $0x1fc] ss:$48 sps:$4 sm:$0xff]  }
  0x75   :  { %1972 = vmatprep.subr.bf16.mxu1 %v5716_v23  ;;  %v5806_v23 = vld [vmem:[#allocation5 + $0x4f4] ss:$48 sps:$4 sm:$0xff]  }
  0x77   :  { %2000 = vmatpush1.bf16.msra.mxu0 %v5717_v26  ;;  %v5807_v26 = vld [vmem:[#allocation5 + $0x1f8] ss:$48 sps:$4 sm:$0xff]  }
  0x78   :  { %1973 = vmatpush2.bf16.msra.mxu1 %v5714_v25  ;;  %2001 = vmatprep.subr.bf16.mxu0 %v5725_v28  ;;  %v5804_v25 = vld [vmem:[#allocation5 + $0x4f0] ss:$48 sps:$4 sm:$0xff]   ;;  %v5815_v28 = vld [vmem:[#allocation5 + $0x19c] ss:$48 sps:$4 sm:$0xff]  }
  0x79   :  { %1974 = vmatprep.subr.bf16.mxu1 %v5722_v27  ;;  %v5812_v27 = vld [vmem:[#allocation5 + $0x494] ss:$48 sps:$4 sm:$0xff]  }
  0x7b   :  { %2002 = vmatpush1.bf16.msra.mxu0 %v5723_v30  ;;  %v5813_v30 = vld [vmem:[#allocation5 + $0x198] ss:$48 sps:$4 sm:$0xff]  }
  0x7c   :  { %1975 = vmatpush2.bf16.msra.mxu1 %v5720_v29  ;;  %2003 = vmatprep.subr.bf16.mxu0 %v5731_v32  ;;  %v5810_v29 = vld [vmem:[#allocation5 + $0x490] ss:$48 sps:$4 sm:$0xff]   ;;  %v5821_v32 = vld [vmem:[#allocation5 + $0x13c] ss:$48 sps:$4 sm:$0xff]  }
  0x7d   :  { %1976 = vmatprep.subr.bf16.mxu1 %v5728_v31  ;;  %v5818_v31 = vld [vmem:[#allocation5 + $0x434] ss:$48 sps:$4 sm:$0xff]  }
  0x7f   :  { %2004 = vmatpush1.bf16.msra.mxu0 %v5729_v34  ;;  %v5819_v34 = vld [vmem:[#allocation5 + $0x138] ss:$48 sps:$4 sm:$0xff]  }
  0x80   :  { %1977 = vmatpush2.bf16.msra.mxu1 %v5726_v33  ;;  %2005 = vmatprep.subr.bf16.mxu0 %v5737_v36  ;;  %v5816_v33 = vld [vmem:[#allocation5 + $0x430] ss:$48 sps:$4 sm:$0xff]   ;;  %v5827_v36 = vld [vmem:[#allocation5 + $0xdc] ss:$48 sps:$4 sm:$0xff]  }
  0x81   :  { %1978 = vmatprep.subr.bf16.mxu1 %v5734_v35  ;;  %v5824_v35 = vld [vmem:[#allocation5 + $0x3d4] ss:$48 sps:$4 sm:$0xff]  }
  0x83   :  { %2006 = vmatpush1.bf16.msra.mxu0 %v5735_v39  ;;  %v5825_v39 = vld [vmem:[#allocation5 + $0xd8] ss:$48 sps:$4 sm:$0xff]  }
  0x84   :  { %1979 = vmatpush2.bf16.msra.mxu1 %v5732_v38  ;;  %2007 = vmatprep.subr.bf16.mxu0 %v5743_v41  ;;  %v5822_v38 = vld [vmem:[#allocation5 + $0x3d0] ss:$48 sps:$4 sm:$0xff]   ;;  %v5833_v41 = vld [vmem:[#allocation5 + $0x7c] ss:$48 sps:$4 sm:$0xff]  }
  0x85   :  { %1980 = vmatprep.subr.bf16.mxu1 %v5740_v40  ;;  %v5830_v40 = vld [vmem:[#allocation5 + $0x374] ss:$48 sps:$4 sm:$0xff]  }
  0x87   :  { %2008 = vmatpush1.bf16.msra.mxu0 %v5741_v43  ;;  %v5831_v43 = vld [vmem:[#allocation5 + $0x78] ss:$48 sps:$4 sm:$0xff]  }
  0x88   :  { %1981 = vmatpush2.bf16.msra.mxu1 %v5738_v42  ;;  %2036 = vmatprep.subr.bf16.mxu0 %v5746_v44  ;;  %v5828_v42 = vld [vmem:[#allocation5 + $0x370] ss:$48 sps:$4 sm:$0xff]   ;;  %v5836_v44 = vld [vmem:[#allocation5 + $0x314] ss:$48 sps:$4 sm:$0xff]  }
  0x89   :  { %2079 = vmatprep.subr.bf16.mxu1 %v5749_v45  ;;  %v5839_v45 = vld [vmem:[#allocation5 + $0x1c] ss:$48 sps:$4 sm:$0xff]  }
  0x8a   :  { %2026 = vmatmul.mubr.bf16.vlgmr.msra.gmra.mxu0 %v6557_v37 }
  0x8b   :  { %1983 = vmatmul.mubr.bf16.vlgmr.msra.gmra.mxu1 %v6564_v12  ;;  %2037 = vmatpush1.bf16.msra.mxu0 %v5744_v46  ;;  %v5834_v46 = vld [vmem:[#allocation5 + $0x310] ss:$48 sps:$4 sm:$0xff]  }
  0x8c   :  { %2080 = vmatpush1.bf16.msra.mxu1 %v5747_v47  ;;  %2038 = vmatprep.subr.bf16.mxu0 %v5752_v48  ;;  %v5837_v47 = vld [vmem:[#allocation5 + $0x18] ss:$48 sps:$4 sm:$0xff]   ;;  %v5842_v48 = vld [vmem:[#allocation5 + $0x5bc] ss:$48 sps:$4 sm:$0xff]  }
  0x8d   :  { %2081 = vmatprep.subr.bf16.mxu1 %v5755_v49  ;;  %2111 = vmatprep.mubr.bf16.mxu1 %v6512_v0  ;;  %v5845_v49 = vld [vmem:[#allocation5 + $0x8bc] ss:$48 sps:$4 sm:$0xff]  }
  0x8e   :  { %2068 = vmatprep.mubr.bf16.mxu0 %v6560_v54 }
  0x8f   :  { %2039 = vmatpush1.bf16.msra.mxu0 %v5750_v50  ;;  %v5840_v50 = vld [vmem:[#allocation5 + $0x5b8] ss:$48 sps:$4 sm:$0xff]  }
  0x90   :  { %2082 = vmatpush1.bf16.msra.mxu1 %v5753_v51  ;;  %2040 = vmatprep.subr.bf16.mxu0 %v5758_v52  ;;  %v5843_v51 = vld [vmem:[#allocation5 + $0x8b8] ss:$48 sps:$4 sm:$0xff]   ;;  %v5848_v52 = vld [vmem:[#allocation5 + $0x55c] ss:$48 sps:$4 sm:$0xff]  }
  0x91   :  { %2083 = vmatprep.subr.bf16.mxu1 %v5761_v53  ;;  %v5851_v53 = vld [vmem:[#allocation5 + $0x85c] ss:$48 sps:$4 sm:$0xff]  }
  0x93   :  { %2041 = vmatpush1.bf16.msra.mxu0 %v5756_v55  ;;  %v5846_v55 = vld [vmem:[#allocation5 + $0x558] ss:$48 sps:$4 sm:$0xff]  }
  0x94   :  { %2084 = vmatpush1.bf16.msra.mxu1 %v5759_v56  ;;  %2042 = vmatprep.subr.bf16.mxu0 %v5764_v57  ;;  %v5849_v56 = vld [vmem:[#allocation5 + $0x858] ss:$48 sps:$4 sm:$0xff]   ;;  %v5854_v57 = vld [vmem:[#allocation5 + $0x4fc] ss:$48 sps:$4 sm:$0xff]  }
  0x95   :  { %2085 = vmatprep.subr.bf16.mxu1 %v5767_v58  ;;  %v5857_v58 = vld [vmem:[#allocation5 + $0x7fc] ss:$48 sps:$4 sm:$0xff]  }
  0x97   :  { %2043 = vmatpush1.bf16.msra.mxu0 %v5762_v59  ;;  %v5852_v59 = vld [vmem:[#allocation5 + $0x4f8] ss:$48 sps:$4 sm:$0xff]  }
  0x98   :  { %2086 = vmatpush1.bf16.msra.mxu1 %v5765_v60  ;;  %2044 = vmatprep.subr.bf16.mxu0 %v5770_v61  ;;  %v5855_v60 = vld [vmem:[#allocation5 + $0x7f8] ss:$48 sps:$4 sm:$0xff]   ;;  %v5860_v61 = vld [vmem:[#allocation5 + $0x49c] ss:$48 sps:$4 sm:$0xff]  }
  0x99   :  { %2087 = vmatprep.subr.bf16.mxu1 %v5773_v62  ;;  %v5863_v62 = vld [vmem:[#allocation5 + $0x79c] ss:$48 sps:$4 sm:$0xff]  }
  0x9b   :  { %2045 = vmatpush1.bf16.msra.mxu0 %v5768_v63  ;;  %v5858_v63 = vld [vmem:[#allocation5 + $0x498] ss:$48 sps:$4 sm:$0xff]  }
  0x9c   :  { %2088 = vmatpush1.bf16.msra.mxu1 %v5771_v1  ;;  %2046 = vmatprep.subr.bf16.mxu0 %v5776_v2  ;;  %v5861_v1 = vld [vmem:[#allocation5 + $0x798] ss:$48 sps:$4 sm:$0xff]   ;;  %v5866_v2 = vld [vmem:[#allocation5 + $0x43c] ss:$48 sps:$4 sm:$0xff]  }
  0x9d   :  { %2089 = vmatprep.subr.bf16.mxu1 %v5779_v3  ;;  %v5869_v3 = vld [vmem:[#allocation5 + $0x73c] ss:$48 sps:$4 sm:$0xff]  }
  0x9f   :  { %2047 = vmatpush1.bf16.msra.mxu0 %v5774_v4  ;;  %v5864_v4 = vld [vmem:[#allocation5 + $0x438] ss:$48 sps:$4 sm:$0xff]  }
  0xa0   :  { %2090 = vmatpush1.bf16.msra.mxu1 %v5777_v5  ;;  %2048 = vmatprep.subr.bf16.mxu0 %v5782_v6  ;;  %v5867_v5 = vld [vmem:[#allocation5 + $0x738] ss:$48 sps:$4 sm:$0xff]   ;;  %v5872_v6 = vld [vmem:[#allocation5 + $0x3dc] ss:$48 sps:$4 sm:$0xff]  }
  0xa1   :  { %2091 = vmatprep.subr.bf16.mxu1 %v5785_v7  ;;  %v5875_v7 = vld [vmem:[#allocation5 + $0x6dc] ss:$48 sps:$4 sm:$0xff]  }
  0xa3   :  { %2049 = vmatpush1.bf16.msra.mxu0 %v5780_v8  ;;  %v5870_v8 = vld [vmem:[#allocation5 + $0x3d8] ss:$48 sps:$4 sm:$0xff]  }
  0xa4   :  { %2092 = vmatpush1.bf16.msra.mxu1 %v5783_v9  ;;  %2050 = vmatprep.subr.bf16.mxu0 %v5788_v10  ;;  %v5873_v9 = vld [vmem:[#allocation5 + $0x6d8] ss:$48 sps:$4 sm:$0xff]   ;;  %v5878_v10 = vld [vmem:[#allocation5 + $0x37c] ss:$48 sps:$4 sm:$0xff]  }
  0xa5   :  { %2093 = vmatprep.subr.bf16.mxu1 %v5791_v11  ;;  %v5881_v11 = vld [vmem:[#allocation5 + $0x67c] ss:$48 sps:$4 sm:$0xff]  }
  0xa7   :  { %2051 = vmatpush1.bf16.msra.mxu0 %v5786_v13  ;;  %v5876_v13 = vld [vmem:[#allocation5 + $0x378] ss:$48 sps:$4 sm:$0xff]  }
  0xa8   :  { %2094 = vmatpush1.bf16.msra.mxu1 %v5789_v14  ;;  %2052 = vmatprep.subr.bf16.mxu0 %v5794_v15  ;;  %v5879_v14 = vld [vmem:[#allocation5 + $0x678] ss:$48 sps:$4 sm:$0xff]   ;;  %v5884_v15 = vld [vmem:[#allocation5 + $0x31c] ss:$48 sps:$4 sm:$0xff]  }
  0xa9   :  { %2122 = vmatprep.subr.bf16.mxu1 %v5797_v16  ;;  %v5887_v16 = vld [vmem:[#allocation5 + $0x61c] ss:$48 sps:$4 sm:$0xff]  }
  0xab   :  { %2112 = vmatmul.mubr.bf16.vlgmr.msra.gmra.mxu1 %v6557_v37  ;;  %2053 = vmatpush2.bf16.msra.mxu0 %v5792_v17  ;;  %v5882_v17 = vld [vmem:[#allocation5 + $0x318] ss:$48 sps:$4 sm:$0xff]  }
  0xac   :  { %2123 = vmatpush1.bf16.msra.mxu1 %v5795_v18  ;;  %2054 = vmatprep.subr.bf16.mxu0 %v5800_v19  ;;  %v5885_v18 = vld [vmem:[#allocation5 + $0x618] ss:$48 sps:$4 sm:$0xff]   ;;  %v5890_v19 = vld [vmem:[#allocation5 + $0x2c4] ss:$48 sps:$4 sm:$0xff]  }
  0xad   :  { %2124 = vmatprep.subr.bf16.mxu1 %v5803_v20  ;;  %2154 = vmatprep.mubr.bf16.mxu1 %v6560_v54  ;;  %v5893_v20 = vld [vmem:[#allocation5 + $0x8c4] ss:$48 sps:$4 sm:$0xff]  }
  0xaf   :  { %2055 = vmatpush2.bf16.msra.mxu0 %v5798_v21  ;;  %v5888_v21 = vld [vmem:[#allocation5 + $0x2c0] ss:$48 sps:$4 sm:$0xff]  }
  0xb0   :  { %2125 = vmatpush1.bf16.msra.mxu1 %v5801_v22  ;;  %2056 = vmatprep.subr.bf16.mxu0 %v5806_v23  ;;  %v5891_v22 = vld [vmem:[#allocation5 + $0x8c0] ss:$48 sps:$4 sm:$0xff]   ;;  %v5896_v23 = vld [vmem:[#allocation5 + $0x264] ss:$48 sps:$4 sm:$0xff]  }
  0xb1   :  { %2126 = vmatprep.subr.bf16.mxu1 %v5809_v24  ;;  %v5899_v24 = vld [vmem:[#allocation5 + $0x864] ss:$48 sps:$4 sm:$0xff]  }
  0xb3   :  { %2057 = vmatpush2.bf16.msra.mxu0 %v5804_v25  ;;  %v5894_v25 = vld [vmem:[#allocation5 + $0x260] ss:$48 sps:$4 sm:$0xff]  }
  0xb4   :  { %2127 = vmatpush1.bf16.msra.mxu1 %v5807_v26  ;;  %2058 = vmatprep.subr.bf16.mxu0 %v5812_v27  ;;  %v5897_v26 = vld [vmem:[#allocation5 + $0x860] ss:$48 sps:$4 sm:$0xff]   ;;  %v5902_v27 = vld [vmem:[#allocation5 + $0x204] ss:$48 sps:$4 sm:$0xff]  }
  0xb5   :  { %2128 = vmatprep.subr.bf16.mxu1 %v5815_v28  ;;  %v5905_v28 = vld [vmem:[#allocation5 + $0x804] ss:$48 sps:$4 sm:$0xff]  }
  0xb7   :  { %2059 = vmatpush2.bf16.msra.mxu0 %v5810_v29  ;;  %v5900_v29 = vld [vmem:[#allocation5 + $0x200] ss:$48 sps:$4 sm:$0xff]  }
  0xb8   :  { %2129 = vmatpush1.bf16.msra.mxu1 %v5813_v30  ;;  %2060 = vmatprep.subr.bf16.mxu0 %v5818_v31  ;;  %v5903_v30 = vld [vmem:[#allocation5 + $0x800] ss:$48 sps:$4 sm:$0xff]   ;;  %v5908_v31 = vld [vmem:[#allocation5 + $0x1a4] ss:$48 sps:$4 sm:$0xff]  }
  0xb9   :  { %2130 = vmatprep.subr.bf16.mxu1 %v5821_v32  ;;  %v5911_v32 = vld [vmem:[#allocation5 + $0x7a4] ss:$48 sps:$4 sm:$0xff]  }
  0xbb   :  { %2061 = vmatpush2.bf16.msra.mxu0 %v5816_v33  ;;  %v5906_v33 = vld [vmem:[#allocation5 + $0x1a0] ss:$48 sps:$4 sm:$0xff]  }
  0xbc   :  { %2131 = vmatpush1.bf16.msra.mxu1 %v5819_v34  ;;  %2062 = vmatprep.subr.bf16.mxu0 %v5824_v35  ;;  %v5909_v34 = vld [vmem:[#allocation5 + $0x7a0] ss:$48 sps:$4 sm:$0xff]   ;;  %v5914_v35 = vld [vmem:[#allocation5 + $0x144] ss:$48 sps:$4 sm:$0xff]  }
  0xbd   :  { %2132 = vmatprep.subr.bf16.mxu1 %v5827_v36  ;;  %v5917_v36 = vld [vmem:[#allocation5 + $0x744] ss:$48 sps:$4 sm:$0xff]  }
  0xbf   :  { %2063 = vmatpush2.bf16.msra.mxu0 %v5822_v38  ;;  %v5912_v38 = vld [vmem:[#allocation5 + $0x140] ss:$48 sps:$4 sm:$0xff]  }
  0xc0   :  { %2133 = vmatpush1.bf16.msra.mxu1 %v5825_v39  ;;  %2064 = vmatprep.subr.bf16.mxu0 %v5830_v40  ;;  %v5915_v39 = vld [vmem:[#allocation5 + $0x740] ss:$48 sps:$4 sm:$0xff]   ;;  %v5920_v40 = vld [vmem:[#allocation5 + $0xe4] ss:$48 sps:$4 sm:$0xff]  }
  0xc1   :  { %2134 = vmatprep.subr.bf16.mxu1 %v5833_v41  ;;  %v5923_v41 = vld [vmem:[#allocation5 + $0x6e4] ss:$48 sps:$4 sm:$0xff]  }
  0xc3   :  { %2065 = vmatpush2.bf16.msra.mxu0 %v5828_v42  ;;  %v5918_v42 = vld [vmem:[#allocation5 + $0xe0] ss:$48 sps:$4 sm:$0xff]  }
  0xc4   :  { %2135 = vmatpush1.bf16.msra.mxu1 %v5831_v43  ;;  %2066 = vmatprep.subr.bf16.mxu0 %v5836_v44  ;;  %v5921_v43 = vld [vmem:[#allocation5 + $0x6e0] ss:$48 sps:$4 sm:$0xff]   ;;  %v5926_v44 = vld [vmem:[#allocation5 + $0x84] ss:$48 sps:$4 sm:$0xff]  }
  0xc5   :  { %2136 = vmatprep.subr.bf16.mxu1 %v5839_v45  ;;  %v5929_v45 = vld [vmem:[#allocation5 + $0x684] ss:$48 sps:$4 sm:$0xff]  }
  0xc7   :  { %2067 = vmatpush2.bf16.msra.mxu0 %v5834_v46  ;;  %v5924_v46 = vld [vmem:[#allocation5 + $0x80] ss:$48 sps:$4 sm:$0xff]  }
  0xc8   :  { %2137 = vmatpush1.bf16.msra.mxu1 %v5837_v47  ;;  %2165 = vmatprep.subr.bf16.mxu0 %v5845_v49  ;;  %v5927_v47 = vld [vmem:[#allocation5 + $0x680] ss:$48 sps:$4 sm:$0xff]   ;;  %v5935_v49 = vld [vmem:[#allocation5 + $0x624] ss:$48 sps:$4 sm:$0xff]  }
  0xc9   :  { %2138 = vmatprep.subr.bf16.mxu1 %v5842_v48  ;;  %v5932_v48 = vld [vmem:[#allocation5 + $0x24] ss:$48 sps:$4 sm:$0xff]  }
  0xca   :  { %2069 = vmatmul.mubr.bf16.vlgmr.msra.gmra.mxu0 %v6564_v12 }
  0xcb   :  { %2166 = vmatpush1.bf16.msra.mxu0 %v5843_v51  ;;  %2197 = vmatprep.mubr.bf16.mxu0 %v6512_v0  ;;  %v5933_v51 = vld [vmem:[#allocation5 + $0x620] ss:$48 sps:$4 sm:$0xff]  }
  0xcc   :  { %2139 = vmatpush2.bf16.msra.mxu1 %v5840_v50  ;;  %2167 = vmatprep.subr.bf16.mxu0 %v5851_v53  ;;  %v5930_v50 = vld [vmem:[#allocation5 + $0x20] ss:$48 sps:$4 sm:$0xff]   ;;  %v5941_v53 = vld [vmem:[#allocation5 + $0x2cc] ss:$48 sps:$4 sm:$0xff]  }
  0xcd   :  { %2140 = vmatprep.subr.bf16.mxu1 %v5848_v52  ;;  %v5938_v52 = vld [vmem:[#allocation5 + $0x5c4] ss:$48 sps:$4 sm:$0xff]  }
  0xcf   :  { %2168 = vmatpush1.bf16.msra.mxu0 %v5849_v56  ;;  %v5939_v56 = vld [vmem:[#allocation5 + $0x2c8] ss:$48 sps:$4 sm:$0xff]  }
  0xd0   :  { %2141 = vmatpush2.bf16.msra.mxu1 %v5846_v55  ;;  %2169 = vmatprep.subr.bf16.mxu0 %v5857_v58  ;;  %v5936_v55 = vld [vmem:[#allocation5 + $0x5c0] ss:$48 sps:$4 sm:$0xff]   ;;  %v5947_v58 = vld [vmem:[#allocation5 + $0x26c] ss:$48 sps:$4 sm:$0xff]  }
  0xd1   :  { %2142 = vmatprep.subr.bf16.mxu1 %v5854_v57  ;;  %v5944_v57 = vld [vmem:[#allocation5 + $0x564] ss:$48 sps:$4 sm:$0xff]  }
  0xd3   :  { %2170 = vmatpush1.bf16.msra.mxu0 %v5855_v60  ;;  %v5945_v60 = vld [vmem:[#allocation5 + $0x268] ss:$48 sps:$4 sm:$0xff]  }
  0xd4   :  { %2143 = vmatpush2.bf16.msra.mxu1 %v5852_v59  ;;  %2171 = vmatprep.subr.bf16.mxu0 %v5863_v62  ;;  %v5942_v59 = vld [vmem:[#allocation5 + $0x560] ss:$48 sps:$4 sm:$0xff]   ;;  %v5953_v62 = vld [vmem:[#allocation5 + $0x20c] ss:$48 sps:$4 sm:$0xff]  }
  0xd5   :  { %2144 = vmatprep.subr.bf16.mxu1 %v5860_v61  ;;  %v5950_v61 = vld [vmem:[#allocation5 + $0x504] ss:$48 sps:$4 sm:$0xff]  }
  0xd7   :  { %2172 = vmatpush1.bf16.msra.mxu0 %v5861_v1  ;;  %v5951_v1 = vld [vmem:[#allocation5 + $0x208] ss:$48 sps:$4 sm:$0xff]  }
  0xd8   :  { %2145 = vmatpush2.bf16.msra.mxu1 %v5858_v63  ;;  %2173 = vmatprep.subr.bf16.mxu0 %v5869_v3  ;;  %v5948_v63 = vld [vmem:[#allocation5 + $0x500] ss:$48 sps:$4 sm:$0xff]   ;;  %v5959_v3 = vld [vmem:[#allocation5 + $0x1ac] ss:$48 sps:$4 sm:$0xff]  }
  0xd9   :  { %2146 = vmatprep.subr.bf16.mxu1 %v5866_v2  ;;  %v5956_v2 = vld [vmem:[#allocation5 + $0x4a4] ss:$48 sps:$4 sm:$0xff]  }
  0xdb   :  { %2174 = vmatpush1.bf16.msra.mxu0 %v5867_v5  ;;  %v5957_v5 = vld [vmem:[#allocation5 + $0x1a8] ss:$48 sps:$4 sm:$0xff]  }
  0xdc   :  { %2147 = vmatpush2.bf16.msra.mxu1 %v5864_v4  ;;  %2175 = vmatprep.subr.bf16.mxu0 %v5875_v7  ;;  %v5954_v4 = vld [vmem:[#allocation5 + $0x4a0] ss:$48 sps:$4 sm:$0xff]   ;;  %v5965_v7 = vld [vmem:[#allocation5 + $0x14c] ss:$48 sps:$4 sm:$0xff]  }
  0xdd   :  { %2148 = vmatprep.subr.bf16.mxu1 %v5872_v6  ;;  %v5962_v6 = vld [vmem:[#allocation5 + $0x444] ss:$48 sps:$4 sm:$0xff]  }
  0xdf   :  { %2176 = vmatpush1.bf16.msra.mxu0 %v5873_v9  ;;  %v5968_v9 = vld [vmem:[#allocation5 + $0x3e4] ss:$48 sps:$4 sm:$0xff]  }
  0xe0   :  { %2149 = vmatpush2.bf16.msra.mxu1 %v5870_v8  ;;  %2177 = vmatprep.subr.bf16.mxu0 %v5881_v11  ;;  %v5960_v8 = vld [vmem:[#allocation5 + $0x440] ss:$48 sps:$4 sm:$0xff]  }
  0xe1   :  { %2150 = vmatprep.subr.bf16.mxu1 %v5878_v10  ;;  %v5971_v10 = vld [vmem:[#allocation5 + $0xec] ss:$48 sps:$4 sm:$0xff]   ;;  %v5966_v11 = vld [vmem:[#allocation5 + $0x3e0] ss:$48 sps:$4 sm:$0xff]  }
  0xe3   :  { %2178 = vmatpush1.bf16.msra.mxu0 %v5879_v14  ;;  %v5974_v14 = vld [vmem:[#allocation5 + $0x384] ss:$48 sps:$4 sm:$0xff]  }
  0xe4   :  { %2151 = vmatpush2.bf16.msra.mxu1 %v5876_v13  ;;  %2179 = vmatprep.subr.bf16.mxu0 %v5887_v16  ;;  %v5969_v13 = vld [vmem:[#allocation5 + $0xe8] ss:$48 sps:$4 sm:$0xff]   ;;  %v5977_v16 = vld [vmem:[#allocation5 + $0x8c] ss:$48 sps:$4 sm:$0xff]  }
  0xe5   :  { %2152 = vmatprep.subr.bf16.mxu1 %v5884_v15  ;;  %v364_v15 = vlaneseq }
  0xe7   :  { %2180 = vmatpush1.bf16.msra.mxu0 %v5885_v18  ;;  %v5975_v18 = vld [vmem:[#allocation5 + $0x88] ss:$48 sps:$4 sm:$0xff]  }
  0xe8   :  { %2153 = vmatpush2.bf16.msra.mxu1 %v5882_v17  ;;  %2208 = vmatprep.subr.bf16.mxu0 %v5890_v19  ;;  %v5972_v17 = vld [vmem:[#allocation5 + $0x380] ss:$48 sps:$4 sm:$0xff]   ;;  %v5980_v19 = vld [vmem:[#allocation5 + $0x324] ss:$48 sps:$4 sm:$0xff]  }
  0xe9   :  { %2251 = vmatprep.subr.bf16.mxu1 %v5893_v20  ;;  %v6582_v20 = vshrl.u32 %v364_v15, 7  ;;  %v6026_v15 = vld [vmem:[#allocation5 + $0x328] ss:$48 sps:$4 sm:$0xff]  }
  0xea   :  { %2198 = vmatmul.mubr.bf16.vlgmr.msra.gmra.mxu0 %v6557_v37 }
  0xeb   :  { %2155 = vmatmul.mubr.bf16.vlgmr.msra.gmra.mxu1 %v6564_v12  ;;  %2209 = vmatpush1.bf16.msra.mxu0 %v5888_v21  ;;  %v5983_v21 = vld [vmem:[#allocation5 + $0x2c] ss:$48 sps:$4 sm:$0xff]  }
  0xec   :  { %2252 = vmatpush1.bf16.msra.mxu1 %v5891_v22  ;;  %2210 = vmatprep.subr.bf16.mxu0 %v5896_v23  ;;  %v5978_v22 = vld [vmem:[#allocation5 + $0x320] ss:$48 sps:$4 sm:$0xff]   ;;  %v5981_v23 = vld [vmem:[#allocation5 + $0x28] ss:$48 sps:$4 sm:$0xff]  }
  0xed   :  { %2253 = vmatprep.subr.bf16.mxu1 %v5899_v24  ;;  %2283 = vmatprep.mubr.bf16.mxu1 %v6512_v0  ;;  %v6587_v24 = vld [vmem:[%s6734_s2] sm:$0xff] }
  0xee   :  { %2240 = vmatprep.mubr.bf16.mxu0 %v6560_v54 }
  0xef   :  { %2211 = vmatpush1.bf16.msra.mxu0 %v5894_v25  ;;  %v6590_v25 = vsub.s32 0, %v6582_v20 }
  0xf0   :  { %2254 = vmatpush1.bf16.msra.mxu1 %v5897_v26  ;;  %2212 = vmatprep.subr.bf16.mxu0 %v5902_v27  ;;  %v5986_v26 = vld [vmem:[#allocation5 + $0x5cc] ss:$48 sps:$4 sm:$0xff]  }
  0xf1   :  { %2255 = vmatprep.subr.bf16.mxu1 %v5905_v28  ;;  %v5989_v27 = vld [vmem:[#allocation5 + $0x8cc] ss:$48 sps:$4 sm:$0xff]   ;;  %v5984_v28 = vld [vmem:[#allocation5 + $0x5c8] ss:$48 sps:$4 sm:$0xff]  }
  0xf3   :  { %2213 = vmatpush1.bf16.msra.mxu0 %v5900_v29  ;;  %v367_v29 = vrot.slane %v6587_v24, %v6590_v25 }
  0xf4   :  { %2256 = vmatpush1.bf16.msra.mxu1 %v5903_v30  ;;  %2214 = vmatprep.subr.bf16.mxu0 %v5908_v31  ;;  %v5987_v30 = vld [vmem:[#allocation5 + $0x8c8] ss:$48 sps:$4 sm:$0xff]   ;;  %v5992_v31 = vld [vmem:[#allocation5 + $0x56c] ss:$48 sps:$4 sm:$0xff]  }
  0xf5   :  { %2257 = vmatprep.subr.bf16.mxu1 %v5911_v32 }
  0xf7   :  { %2215 = vmatpush1.bf16.msra.mxu0 %v5906_v33  ;;  %v5995_v33 = vld [vmem:[#allocation5 + $0x86c] ss:$48 sps:$4 sm:$0xff]  }
  0xf8   :  { %2258 = vmatpush1.bf16.msra.mxu1 %v5909_v34  ;;  %2216 = vmatprep.subr.bf16.mxu0 %v5914_v35  ;;  %v5990_v35 = vld [vmem:[#allocation5 + $0x568] ss:$48 sps:$4 sm:$0xff]  }
  0xf9   :  { %2259 = vmatprep.subr.bf16.mxu1 %v5917_v36  ;;  %v5993_v36 = vld [vmem:[#allocation5 + $0x868] ss:$48 sps:$4 sm:$0xff]  }
  0xfb   :  { %2217 = vmatpush1.bf16.msra.mxu0 %v5912_v38 }
  0xfc   :  { %2260 = vmatpush1.bf16.msra.mxu1 %v5915_v39  ;;  %2218 = vmatprep.subr.bf16.mxu0 %v5920_v40  ;;  %v5998_v39 = vld [vmem:[#allocation5 + $0x50c] ss:$48 sps:$4 sm:$0xff]  }
  0xfd   :  { %2261 = vmatprep.subr.bf16.mxu1 %v5923_v41  ;;  %v6001_v40 = vld [vmem:[#allocation5 + $0x80c] ss:$48 sps:$4 sm:$0xff]  }
  0xff   :  { %2219 = vmatpush1.bf16.msra.mxu0 %v5918_v42 }
 0x100   :  { %2262 = vmatpush1.bf16.msra.mxu1 %v5921_v43  ;;  %2220 = vmatprep.subr.bf16.mxu0 %v5926_v44  ;;  %v5996_v44 = vld [vmem:[#allocation5 + $0x508] ss:$48 sps:$4 sm:$0xff]  }
 0x101   :  { %2263 = vmatprep.subr.bf16.mxu1 %v5929_v45  ;;  %v5999_v45 = vld [vmem:[#allocation5 + $0x808] ss:$48 sps:$4 sm:$0xff]  }
 0x103   :  { %2221 = vmatpush1.bf16.msra.mxu0 %v5924_v46 }
 0x104   :  { %2264 = vmatpush1.bf16.msra.mxu1 %v5927_v47  ;;  %2222 = vmatprep.subr.bf16.mxu0 %v5932_v48  ;;  %v6004_v47 = vld [vmem:[#allocation5 + $0x4ac] ss:$48 sps:$4 sm:$0xff]  }
 0x105   :  { %2265 = vmatprep.subr.bf16.mxu1 %v5935_v49  ;;  %v6007_v48 = vld [vmem:[#allocation5 + $0x7ac] ss:$48 sps:$4 sm:$0xff]  }
 0x107   :  { %2223 = vmatpush1.bf16.msra.mxu0 %v5930_v50 }
 0x108   :  { %2266 = vmatpush1.bf16.msra.mxu1 %v5933_v51  ;;  %2224 = vmatprep.subr.bf16.mxu0 %v5938_v52  ;;  %v6002_v52 = vld [vmem:[#allocation5 + $0x4a8] ss:$48 sps:$4 sm:$0xff]  }
 0x109   :  { %2294 = vmatprep.subr.bf16.mxu1 %v5941_v53  ;;  %v6005_v53 = vld [vmem:[#allocation5 + $0x7a8] ss:$48 sps:$4 sm:$0xff]  }
 0x10b   :  { %2284 = vmatmul.mubr.bf16.vlgmr.msra.gmra.mxu1 %v6557_v37  ;;  %2225 = vmatpush2.bf16.msra.mxu0 %v5936_v55  ;;  %v1941_v32 = vpop.f32.mrf.mxu1  ;;  %v6010_v55 = vld [vmem:[#allocation5 + $0x44c] ss:$48 sps:$4 sm:$0xff]  }
 0x10c   :  { %2295 = vmatpush1.bf16.msra.mxu1 %v5939_v56  ;;  %2226 = vmatprep.subr.bf16.mxu0 %v5944_v57  ;;  %v6013_v56 = vld [vmem:[#allocation5 + $0x74c] ss:$48 sps:$4 sm:$0xff]  }
 0x10d   :  { %2296 = vmatprep.subr.bf16.mxu1 %v5947_v58  ;;  %2326 = vmatprep.mubr.bf16.mxu1 %v6560_v54  ;;  %v5963_v54 = vld [vmem:[#allocation5 + $0x148] ss:$48 sps:$4 sm:$0xff]   ;;  %v1943_v41 = vpop.f32.mrf.mxu1 }
 0x10f   :  { %2227 = vmatpush2.bf16.msra.mxu0 %v5942_v59  ;;  %v1945_v50 = vpop.f32.mrf.mxu1  ;;  %v6008_v59 = vld [vmem:[#allocation5 + $0x448] ss:$48 sps:$4 sm:$0xff]  }
 0x110   :  { %2297 = vmatpush1.bf16.msra.mxu1 %v5945_v60  ;;  %2228 = vmatprep.subr.bf16.mxu0 %v5950_v61  ;;  %v6011_v60 = vld [vmem:[#allocation5 + $0x748] ss:$48 sps:$4 sm:$0xff]   ;;  %v6016_v61 = vld [vmem:[#allocation5 + $0x3ec] ss:$48 sps:$4 sm:$0xff]  }
 0x111   :  { %2298 = vmatprep.subr.bf16.mxu1 %v5953_v62  ;;  %v6019_v62 = vld [vmem:[#allocation5 + $0x6ec] ss:$48 sps:$4 sm:$0xff]  }
 0x113   :  { %2229 = vmatpush2.bf16.msra.mxu0 %v5948_v63  ;;  %v6599_v63 = vsub.s32 1, %v6582_v20 }
 0x114   :  { %2299 = vmatpush1.bf16.msra.mxu1 %v5951_v1  ;;  %2230 = vmatprep.subr.bf16.mxu0 %v5956_v2  ;;  %v6014_v1 = vld [vmem:[#allocation5 + $0x3e8] ss:$48 sps:$4 sm:$0xff]  }
 0x115   :  { %2300 = vmatprep.subr.bf16.mxu1 %v5959_v3  ;;  %v6017_v3 = vld [vmem:[#allocation5 + $0x6e8] ss:$48 sps:$4 sm:$0xff]  }
 0x117   :  { %2231 = vmatpush2.bf16.msra.mxu0 %v5954_v4  ;;  %v371_v4 = vrot.slane %v6587_v24, %v6599_v63 }
 0x118   :  { %2301 = vmatpush1.bf16.msra.mxu1 %v5957_v5  ;;  %2232 = vmatprep.subr.bf16.mxu0 %v5962_v6  ;;  %v6022_v5 = vld [vmem:[#allocation5 + $0x38c] ss:$48 sps:$4 sm:$0xff]  }
 0x119   :  { %2302 = vmatprep.subr.bf16.mxu1 %v5965_v7  ;;  %v6025_v6 = vld [vmem:[#allocation5 + $0x68c] ss:$48 sps:$4 sm:$0xff]  }
 0x11b   :  { %2233 = vmatpush2.bf16.msra.mxu0 %v5960_v8  ;;  %v6020_v8 = vld [vmem:[#allocation5 + $0x388] ss:$48 sps:$4 sm:$0xff]  }
 0x11c   :  { %2303 = vmatpush1.bf16.msra.mxu1 %v5963_v54  ;;  %2234 = vmatprep.subr.bf16.mxu0 %v5968_v9  ;;  %v6023_v54 = vld [vmem:[#allocation5 + $0x688] ss:$48 sps:$4 sm:$0xff]  }
 0x11d   :  { %2304 = vmatprep.subr.bf16.mxu1 %v5971_v10  ;;  %v1947_v10 = vpop.f32.mrf.mxu1 }
 0x11f   :  { %2235 = vmatpush2.bf16.msra.mxu0 %v5966_v11  ;;  %v6028_v11 = vld [vmem:[#allocation5 + $0x32c] ss:$48 sps:$4 sm:$0xff]  }
 0x120   :  { %2305 = vmatpush1.bf16.msra.mxu1 %v5969_v13  ;;  %2236 = vmatprep.subr.bf16.mxu0 %v5974_v14  ;;  %v6031_v13 = vld [vmem:[#allocation5 + $0x62c] ss:$48 sps:$4 sm:$0xff]  }
 0x121   :  { %2306 = vmatprep.subr.bf16.mxu1 %v5977_v16  ;;  %v6029_v16 = vld [vmem:[#allocation5 + $0x628] ss:$48 sps:$4 sm:$0xff]  }
 0x123   :  { %2237 = vmatpush2.bf16.msra.mxu0 %v5972_v17 }
 0x124   :  { %2307 = vmatpush1.bf16.msra.mxu1 %v5975_v18  ;;  %2238 = vmatprep.subr.bf16.mxu0 %v5980_v19  ;;  %v6034_v18 = vld [vmem:[#allocation7 + $0xac] ss:$12 sps:$4 sm:$0xff]  }
 0x125   :  { %2308 = vmatprep.subr.bf16.mxu1 %v5983_v21  ;;  %v6037_v19 = vld [vmem:[#allocation7 + $0x22c] ss:$12 sps:$4 sm:$0xff]  }
 0x127   :  { %2239 = vmatpush2.bf16.msra.mxu0 %v5978_v22  ;;  %v6032_v22 = vld [vmem:[#allocation7 + $0xa8] ss:$12 sps:$4 sm:$0xff]  }
 0x128   :  { %2309 = vmatpush1.bf16.msra.mxu1 %v5981_v23  ;;  %2337 = vmatprep.subr.bf16.mxu0 %v5989_v27  ;;  %v378_v23 = vsub.s32 3, %v6582_v20  ;;  %v6040_v27 = vld [vmem:[#allocation7 + $0x94] ss:$12 sps:$4 sm:$0xff]  }
 0x129   :  { %2310 = vmatprep.subr.bf16.mxu1 %v5986_v26  ;;  %v6035_v26 = vld [vmem:[#allocation7 + $0x228] ss:$12 sps:$4 sm:$0xff]  }
 0x12a   :  { %v1898_v34 = vpop.f32.mrf.mxu0  ;;  %2241 = vmatmul.mubr.bf16.vlgmr.msra.gmra.mxu0 %v6564_v12 }
 0x12b   :  { %v1899_v38 = vadd.f32 %v1898_v34, %v367_v29  ;;  %2338 = vmatpush1.bf16.msra.mxu0 %v5987_v30  ;;  %2369 = vmatprep.mubr.bf16.mxu0 %v6512_v0  ;;  %v379_v30 = vrot.slane %v6587_v24, %v378_v23 }
 0x12c   :  { %2311 = vmatpush2.bf16.msra.mxu1 %v5984_v28  ;;  %v1900_v42 = vpop.f32.mrf.mxu0  ;;  %2339 = vmatprep.subr.bf16.mxu0 %v5995_v33 }
 0x12d   :  { %2312 = vmatprep.subr.bf16.mxu1 %v5992_v31  ;;  %v1942_v43 = vadd.f32 %v1941_v32, %v1899_v38  ;;  %v1901_v9 = vadd.f32 %v1900_v42, %v371_v4  ;;  %v6038_v31 = vld [vmem:[#allocation7 + $0x90] ss:$12 sps:$4 sm:$0xff]   ;;  %v6043_v32 = vld [vmem:[#allocation7 + $0x214] ss:$12 sps:$4 sm:$0xff]  }
 0x12e   :  { %v1902_v46 = vpop.f32.mrf.mxu0  ;;  %v6049_v42 = vld [vmem:[#allocation7 + $0x1fc] ss:$12 sps:$4 sm:$0xff]  }
 0x12f   :  { %v1903_v49 = vadd.f32 %v1902_v46, %v367_v29  ;;  %2340 = vmatpush1.bf16.msra.mxu0 %v5993_v36  ;;  %v2380_v57 = vmax.f32 %v1942_v43, 0.0  ;;  %v1944_v17 = vadd.f32 %v1943_v41, %v1901_v9  ;;  %v6046_v36 = vld [vmem:[#allocation7 + $0x7c] ss:$12 sps:$4 sm:$0xff]   ;;  %v6044_v41 = vld [vmem:[#allocation7 + $0x78] ss:$12 sps:$4 sm:$0xff]  }
 0x130   :  { %2313 = vmatpush2.bf16.msra.mxu1 %v5990_v35  ;;  %2341 = vmatprep.subr.bf16.mxu0 %v6001_v40  ;;  %v1904_v2 = vpop.f32.mrf.mxu0  ;;  %v6041_v35 = vld [vmem:[#allocation7 + $0x210] ss:$12 sps:$4 sm:$0xff]   ;;  %v6077_v9 = vld [vmem:[#allocation7 + $0x180] ss:$12 sps:$4 sm:$0xff]  }
 0x131   :  { %2314 = vmatprep.subr.bf16.mxu1 %v5998_v39  ;;  %v1946_v51 = vadd.f32 %v1945_v50, %v1903_v49  ;;  %v1905_v7 = vadd.f32 %v1904_v2, %v371_v4  ;;  %v2381_v28 = vmax.f32 %v1944_v17, 0.0  ;;  %v6052_v46 = vld [vmem:[#allocation7 + $0x64] ss:$12 sps:$4 sm:$0xff]   ;;  %v6050_v49 = vld [vmem:[#allocation7 + $0x60] ss:$12 sps:$4 sm:$0xff]  }
 0x132   :  { %v6065_v2 = vld [vmem:[#allocation7 + $0x1b0] ss:$12 sps:$4 sm:$0xff]   ;;  %v6091_v17 = vld [vmem:[#allocation7 + $0x2d4] ss:$12 sps:$4 sm:$0xff]  }
 0x133   :  { %v2392_v58 = vmax.f32 %v1946_v51, 0.0  ;;  %2342 = vmatpush1.bf16.msra.mxu0 %v5999_v45  ;;  %v1948_v14 = vadd.f32 %v1947_v10, %v1905_v7  ;;  %v6053_v51 = vld [vmem:[#allocation7 + $0x1e0] ss:$12 sps:$4 sm:$0xff]   ;;  %v6073_v4 = vld [vmem:[#allocation7 + $0x19c] ss:$12 sps:$4 sm:$0xff]  }
 0x134   :  { %2315 = vmatpush2.bf16.msra.mxu1 %v5996_v44  ;;  %2343 = vmatprep.subr.bf16.mxu0 %v6007_v48  ;;  %v6076_v7 = vld [vmem:[#allocation7 + $0x4] ss:$12 sps:$4 sm:$0xff]   ;;  %v6082_v10 = vld [vmem:[#allocation7 + $0x16c] ss:$12 sps:$4 sm:$0xff]  }
 0x135   :  { %2316 = vmatprep.subr.bf16.mxu1 %v6004_v47  ;;  %v6596_v0 = vpack.c.bf16 %v2392_v58, %v2380_v57  ;;  %v2393_v21 = vmax.f32 %v1948_v14, 0.0  ;;  %v6055_v47 = vld [vmem:[#allocation7 + $0x1e4] ss:$12 sps:$4 sm:$0xff]   ;;  %v6083_v14 = vld [vmem:[#allocation7 + $0x2e8] ss:$12 sps:$4 sm:$0xff]  }
 0x137   :  { %2344 = vmatpush1.bf16.msra.mxu0 %v6005_v53  ;;  %v6604_v29 = vpack.c.bf16 %v2393_v21, %v2381_v28  ;;  %v6058_v53 = vld [vmem:[#allocation7 + $0x4c] ss:$12 sps:$4 sm:$0xff]  }
 0x138   :  { %2317 = vmatpush2.bf16.msra.mxu1 %v6002_v52  ;;  %2345 = vmatprep.subr.bf16.mxu0 %v6013_v56  ;;  %v6092_v21 = vld [vmem:[#allocation7 + $0x138] ss:$12 sps:$4 sm:$0xff]   ;;  %v6098_v28 = vld [vmem:[#allocation7 + $0x120] ss:$12 sps:$4 sm:$0xff]  }
 0x139   :  { %2318 = vmatprep.subr.bf16.mxu1 %v6010_v55  ;;  %v6061_v55 = vld [vmem:[#allocation7 + $0x1cc] ss:$12 sps:$4 sm:$0xff]  }
 0x13b   :  { %2346 = vmatpush1.bf16.msra.mxu0 %v6011_v60  ;;  %v6059_v60 = vld [vmem:[#allocation7 + $0x1c8] ss:$12 sps:$4 sm:$0xff]  }
 0x13c   :  { %2319 = vmatpush2.bf16.msra.mxu1 %v6008_v59  ;;  %2347 = vmatprep.subr.bf16.mxu0 %v6019_v62  ;;  %v6056_v59 = vld [vmem:[#allocation7 + $0x48] ss:$12 sps:$4 sm:$0xff]  }
 0x13d   :  { %2320 = vmatprep.subr.bf16.mxu1 %v6016_v61  ;;  %v6064_v61 = vld [vmem:[#allocation7 + $0x34] ss:$12 sps:$4 sm:$0xff]  }
 0x13e   :  { %v6067_v62 = vld [vmem:[#allocation7 + $0x1b4] ss:$12 sps:$4 sm:$0xff]  }
 0x13f   :  { %2348 = vmatpush1.bf16.msra.mxu0 %v6017_v3  ;;  %v6070_v3 = vld [vmem:[#allocation7 + $0x1c] ss:$12 sps:$4 sm:$0xff]  }
 0x140   :  { %2321 = vmatpush2.bf16.msra.mxu1 %v6014_v1  ;;  %2349 = vmatprep.subr.bf16.mxu0 %v6025_v6  ;;  %v6062_v1 = vld [vmem:[#allocation7 + $0x30] ss:$12 sps:$4 sm:$0xff]   ;;  %v6071_v6 = vld [vmem:[#allocation7 + $0x198] ss:$12 sps:$4 sm:$0xff]  }
 0x141   :  { %2322 = vmatprep.subr.bf16.mxu1 %v6022_v5  ;;  %v6068_v5 = vld [vmem:[#allocation7 + $0x18] ss:$12 sps:$4 sm:$0xff]  }
 0x143   :  { %2350 = vmatpush1.bf16.msra.mxu0 %v6023_v54  ;;  %v6074_v54 = vld [vmem:[#allocation7] ss:$12 sps:$4 sm:$0xff]  }
 0x144   :  { %2323 = vmatpush2.bf16.msra.mxu1 %v6020_v8  ;;  %2351 = vmatprep.subr.bf16.mxu0 %v6031_v13  ;;  %v6079_v8 = vld [vmem:[#allocation7 + $0x184] ss:$12 sps:$4 sm:$0xff]   ;;  %v6080_v13 = vld [vmem:[#allocation7 + $0x168] ss:$12 sps:$4 sm:$0xff]  }
 0x145   :  { %2324 = vmatprep.subr.bf16.mxu1 %v6028_v11  ;;  %v6085_v11 = vld [vmem:[#allocation7 + $0x2ec] ss:$12 sps:$4 sm:$0xff]  }
 0x147   :  { %2352 = vmatpush1.bf16.msra.mxu0 %v6029_v16  ;;  %v6086_v16 = vld [vmem:[#allocation7 + $0x150] ss:$12 sps:$4 sm:$0xff]  }
 0x148   :  { %2325 = vmatpush2.bf16.msra.mxu1 %v6026_v15  ;;  %4353 = vmatprep.subr.bf16.mxu0 %v6034_v18  ;;  %v6088_v15 = vld [vmem:[#allocation7 + $0x154] ss:$12 sps:$4 sm:$0xff]   ;;  %v6089_v18 = vld [vmem:[#allocation7 + $0x2d0] ss:$12 sps:$4 sm:$0xff]  }
 0x149   :  { %4396 = vmatprep.subr.bf16.mxu1 %v6037_v19  ;;  %v6094_v19 = vld [vmem:[#allocation7 + $0x13c] ss:$12 sps:$4 sm:$0xff]  }
 0x14a   :  { %v6611_v34 = vpop.f32.mrf.mxu0  ;;  %2370 = vmatmul.mubr.bf16.vlgmr.msra.gmra.mxu0 %v6557_v37 }
 0x14b   :  { %v6609_v33 = vpop.f32.mrf.mxu1  ;;  %2327 = vmatmul.mubr.bf16.vlgmr.msra.gmra.mxu1 %v6564_v12  ;;  %4354 = vmatpush1.bf16.msra.mxu0 %v6032_v22  ;;  %v6047_v12 = vld [vmem:[#allocation7 + $0x1f8] ss:$12 sps:$4 sm:$0xff]   ;;  %v6097_v22 = vld [vmem:[#allocation7 + $0x2bc] ss:$12 sps:$4 sm:$0xff]  }
 0x14c   :  { %4385 = vmatprep.mubr.bf16.mxu0 %v6604_v29  ;;  %4397 = vmatpush1.bf16.msra.mxu1 %v6035_v26  ;;  %v2029_v39 = vpop.f32.mrf.mxu0  ;;  %v6095_v26 = vld [vmem:[#allocation7 + $0x2b8] ss:$12 sps:$4 sm:$0xff]  }
 0x14d   :  { %v1986_v38 = vpop.f32.mrf.mxu1  ;;  %4355 = vmatprep.subr.bf16.mxu0 %v6040_v27  ;;  %4398 = vmatprep.subr.bf16.mxu1 %v6043_v32  ;;  %v6100_v27 = vld [vmem:[#allocation7 + $0x124] ss:$12 sps:$4 sm:$0xff]   ;;  %v6106_v32 = vld [vmem:[#allocation7 + $0x10c] ss:$12 sps:$4 sm:$0xff]  }
 0x14e   :  { %v1987_v40 = vadd.f32 %v1986_v38, %v379_v30  ;;  %v6618_v44 = vpop.f32.mrf.mxu0  ;;  %v6109_v38 = vld [vmem:[#allocation7 + $0x28c] ss:$12 sps:$4 sm:$0xff]  }
 0x14f   :  { %v6616_v43 = vpop.f32.mrf.mxu1  ;;  %4356 = vmatpush1.bf16.msra.mxu0 %v6038_v31  ;;  %v6101_v31 = vld [vmem:[#allocation7 + $0x2a0] ss:$12 sps:$4 sm:$0xff]  }
 0x150   :  { %v2030_v37 = vadd.f32 %v2029_v39, %v1987_v40  ;;  %4399 = vmatpush1.bf16.msra.mxu1 %v6041_v35  ;;  %4357 = vmatprep.subr.bf16.mxu0 %v6046_v36  ;;  %v2033_v50 = vpop.f32.mrf.mxu0  ;;  %v6624_v35 = vsub.s32 2, %v6582_v20  ;;  %v6104_v36 = vld [vmem:[#allocation7 + $0x108] ss:$12 sps:$4 sm:$0xff]  }
 0x151   :  { %v1990_v45 = vpop.f32.mrf.mxu1  ;;  %4400 = vmatprep.subr.bf16.mxu1 %v6049_v42  ;;  %v6107_v39 = vld [vmem:[#allocation7 + $0x288] ss:$12 sps:$4 sm:$0xff]  }
 0x152   :  { %v1991_v48 = vadd.f32 %v1990_v45, %v379_v30  ;;  %v2383_v56 = vmax.f32 %v2030_v37, 0.0  ;;  %v6103_v30 = vld [vmem:[#allocation7 + $0x2a4] ss:$12 sps:$4 sm:$0xff]   ;;  %v6112_v40 = vld [vmem:[#allocation7 + $0xf4] ss:$12 sps:$4 sm:$0xff]   ;;  %v375_v42 = vrot.slane %v6587_v24, %v6624_v35 }
 0x153   :  { %4358 = vmatpush1.bf16.msra.mxu0 %v6044_v41  ;;  %v6115_v41 = vld [vmem:[#allocation7 + $0x274] ss:$12 sps:$4 sm:$0xff]   ;;  %v6113_v37 = vld [vmem:[#allocation7 + $0x270] ss:$12 sps:$4 sm:$0xff]  }
 0x154   :  { %v2034_v52 = vadd.f32 %v2033_v50, %v1991_v48  ;;  %4401 = vmatpush1.bf16.msra.mxu1 %v6047_v12  ;;  %4359 = vmatprep.subr.bf16.mxu0 %v6052_v46  ;;  %v6110_v12 = vld [vmem:[#allocation7 + $0xf0] ss:$12 sps:$4 sm:$0xff]   ;;  %v1989_v46 = vadd.f32 %v6616_v43, %v375_v42  ;;  %v1985_v48 = vadd.f32 %v6609_v33, %v375_v42  ;;  %v6119_v50 = vld [vmem:[#allocation7 + $0x258] ss:$12 sps:$4 sm:$0xff]   ;;  %v6125_v43 = vld [vmem:[#allocation7 + $0x240] ss:$12 sps:$4 sm:$0xff]  }
 0x155   :  { %4402 = vmatprep.subr.bf16.mxu1 %v6055_v47  ;;  %v6118_v45 = vld [vmem:[#allocation7 + $0xdc] ss:$12 sps:$4 sm:$0xff]   ;;  %v386_v33 = vsub.s32 5, %v6582_v20  ;;  %v6163_v42 = vld [vmem:[#allocation7 + $0x4b4] ss:$12 sps:$4 sm:$0xff]  }
 0x156   :  { %v2395_v57 = vmax.f32 %v2034_v52, 0.0  ;;  %v6121_v47 = vld [vmem:[#allocation7 + $0x25c] ss:$12 sps:$4 sm:$0xff]   ;;  %v2032_v52 = vadd.f32 %v6618_v44, %v1989_v46 }
 0x157   :  { %4360 = vmatpush1.bf16.msra.mxu0 %v6050_v49  ;;  %v6116_v49 = vld [vmem:[#allocation7 + $0xd8] ss:$12 sps:$4 sm:$0xff]   ;;  %v6131_v44 = vld [vmem:[#allocation7 + $0x528] ss:$12 sps:$4 sm:$0xff]  }
 0x158   :  { %v6620_v58 = vpack.c.bf16 %v2395_v57, %v2383_v56  ;;  %4403 = vmatpush1.bf16.msra.mxu1 %v6053_v51  ;;  %4361 = vmatprep.subr.bf16.mxu0 %v6058_v53  ;;  %v6124_v51 = vld [vmem:[#allocation7 + $0xc4] ss:$12 sps:$4 sm:$0xff]   ;;  %v2028_v56 = vadd.f32 %v6611_v34, %v1985_v48  ;;  %v6130_v57 = vld [vmem:[#allocation7 + $0x3ac] ss:$12 sps:$4 sm:$0xff]   ;;  %v6169_v46 = vld [vmem:[#allocation7 + $0x49c] ss:$12 sps:$4 sm:$0xff]  }
 0x159   :  { %4404 = vmatprep.subr.bf16.mxu1 %v6061_v55  ;;  %v6127_v53 = vld [vmem:[#allocation7 + $0x244] ss:$12 sps:$4 sm:$0xff]   ;;  %v6122_v55 = vld [vmem:[#allocation7 + $0xc0] ss:$12 sps:$4 sm:$0xff]  }
 0x15a   :  { %4428 = vmatprep.mubr.bf16.mxu1 %v6620_v58  ;;  %v6167_v48 = vld [vmem:[#allocation7 + $0x498] ss:$12 sps:$4 sm:$0xff]  }
 0x15b   :  { %4362 = vmatpush1.bf16.msra.mxu0 %v6056_v59  ;;  %v6133_v59 = vld [vmem:[#allocation7 + $0x52c] ss:$12 sps:$4 sm:$0xff]  }
 0x15c   :  { %4405 = vmatpush1.bf16.msra.mxu1 %v6059_v60  ;;  %4363 = vmatprep.subr.bf16.mxu0 %v6064_v61  ;;  %v2394_v60 = vmax.f32 %v2032_v52, 0.0  ;;  %v6128_v61 = vld [vmem:[#allocation7 + $0x3a8] ss:$12 sps:$4 sm:$0xff]   ;;  %v6173_v52 = vld [vmem:[#allocation7 + $0x480] ss:$12 sps:$4 sm:$0xff]  }
 0x15d   :  { %4406 = vmatprep.subr.bf16.mxu1 %v6067_v62 }
 0x15f   :  { %4364 = vmatpush1.bf16.msra.mxu0 %v6062_v1  ;;  %v2382_v1 = vmax.f32 %v2028_v56, 0.0  ;;  %v394_v56 = vsub.s32 7, %v6582_v20 }
 0x160   :  { %4407 = vmatpush1.bf16.msra.mxu1 %v6065_v2  ;;  %4365 = vmatprep.subr.bf16.mxu0 %v6070_v3  ;;  %v6136_v2 = vld [vmem:[#allocation7 + $0x394] ss:$12 sps:$4 sm:$0xff]   ;;  %v387_v3 = vrot.slane %v6587_v24, %v386_v33 }
 0x161   :  { %4408 = vmatprep.subr.bf16.mxu1 %v6073_v4  ;;  %v6635_v34 = vpack.c.bf16 %v2394_v60, %v2382_v1  ;;  %v6134_v4 = vld [vmem:[#allocation7 + $0x390] ss:$12 sps:$4 sm:$0xff]  }
 0x162   :  { %v6416_v60 = vld [vmem:[%s6734_s2] sm:$0xff] }
 0x163   :  { %4366 = vmatpush1.bf16.msra.mxu0 %v6068_v5  ;;  %v6139_v5 = vld [vmem:[#allocation7 + $0x514] ss:$12 sps:$4 sm:$0xff]   ;;  %v395_v33 = vrot.slane %v6416_v60, %v394_v56  ;;  %v6212_v56 = vld [vmem:[#allocation7 + $0x3d8] ss:$12 sps:$4 sm:$0xff]  }
 0x164   :  { %4409 = vmatpush1.bf16.msra.mxu1 %v6071_v6  ;;  %4367 = vmatprep.subr.bf16.mxu0 %v6076_v7 }
 0x165   :  { %4410 = vmatprep.subr.bf16.mxu1 %v6079_v8  ;;  %v6137_v8 = vld [vmem:[#allocation7 + $0x510] ss:$12 sps:$4 sm:$0xff]  }
 0x167   :  { %4368 = vmatpush1.bf16.msra.mxu0 %v6074_v54 }
 0x168   :  { %4411 = vmatpush1.bf16.msra.mxu1 %v6077_v9  ;;  %4369 = vmatprep.subr.bf16.mxu0 %v6082_v10  ;;  %v6142_v9 = vld [vmem:[#allocation7 + $0x37c] ss:$12 sps:$4 sm:$0xff]  }
 0x169   :  { %4412 = vmatprep.subr.bf16.mxu1 %v6085_v11  ;;  %v6145_v11 = vld [vmem:[#allocation7 + $0x4fc] ss:$12 sps:$4 sm:$0xff]  }
 0x16b   :  { %4370 = vmatpush2.bf16.msra.mxu0 %v6080_v13  ;;  %v6633_v62 = vpop.f32.mrf.mxu1 }
 0x16c   :  { %4413 = vmatpush2.bf16.msra.mxu1 %v6083_v14  ;;  %4371 = vmatprep.subr.bf16.mxu0 %v6088_v15  ;;  %v6140_v14 = vld [vmem:[#allocation7 + $0x378] ss:$12 sps:$4 sm:$0xff]  }
 0x16d   :  { %4414 = vmatprep.subr.bf16.mxu1 %v6091_v17  ;;  %v2115_v6 = vpop.f32.mrf.mxu1  ;;  %v6143_v15 = vld [vmem:[#allocation7 + $0x4f8] ss:$12 sps:$4 sm:$0xff]  }
 0x16e   :  { %v6148_v17 = vld [vmem:[#allocation7 + $0x364] ss:$12 sps:$4 sm:$0xff]  }
 0x16f   :  { %4372 = vmatpush2.bf16.msra.mxu0 %v6086_v16  ;;  %v6642_v13 = vpop.f32.mrf.mxu1 }
 0x170   :  { %4415 = vmatpush2.bf16.msra.mxu1 %v6089_v18  ;;  %4373 = vmatprep.subr.bf16.mxu0 %v6094_v19 }
 0x171   :  { %4416 = vmatprep.subr.bf16.mxu1 %v6097_v22  ;;  %v2119_v22 = vpop.f32.mrf.mxu1 }
 0x173   :  { %4374 = vmatpush2.bf16.msra.mxu0 %v6092_v21  ;;  %v6151_v21 = vld [vmem:[#allocation7 + $0x4e4] ss:$12 sps:$4 sm:$0xff]  }
 0x174   :  { %4417 = vmatpush2.bf16.msra.mxu1 %v6095_v26  ;;  %4375 = vmatprep.subr.bf16.mxu0 %v6100_v27  ;;  %v6146_v26 = vld [vmem:[#allocation7 + $0x360] ss:$12 sps:$4 sm:$0xff]  }
 0x175   :  { %4418 = vmatprep.subr.bf16.mxu1 %v6103_v30  ;;  %v6154_v30 = vld [vmem:[#allocation7 + $0x34c] ss:$12 sps:$4 sm:$0xff]  }
 0x177   :  { %4376 = vmatpush2.bf16.msra.mxu0 %v6098_v28  ;;  %v6149_v28 = vld [vmem:[#allocation7 + $0x4e0] ss:$12 sps:$4 sm:$0xff]  }
 0x178   :  { %4419 = vmatpush2.bf16.msra.mxu1 %v6101_v31  ;;  %4377 = vmatprep.subr.bf16.mxu0 %v6106_v32 }
 0x179   :  { %4420 = vmatprep.subr.bf16.mxu1 %v6109_v38  ;;  %v6157_v38 = vld [vmem:[#allocation7 + $0x4cc] ss:$12 sps:$4 sm:$0xff]  }
 0x17b   :  { %4378 = vmatpush2.bf16.msra.mxu0 %v6104_v36  ;;  %v6152_v36 = vld [vmem:[#allocation7 + $0x348] ss:$12 sps:$4 sm:$0xff]  }
 0x17c   :  { %4421 = vmatpush2.bf16.msra.mxu1 %v6107_v39  ;;  %4379 = vmatprep.subr.bf16.mxu0 %v6112_v40  ;;  %v6155_v39 = vld [vmem:[#allocation7 + $0x4c8] ss:$12 sps:$4 sm:$0xff]  }
 0x17d   :  { %4422 = vmatprep.subr.bf16.mxu1 %v6115_v41  ;;  %v6160_v41 = vld [vmem:[#allocation7 + $0x334] ss:$12 sps:$4 sm:$0xff]  }
 0x17f   :  { %4380 = vmatpush2.bf16.msra.mxu0 %v6110_v12  ;;  %v6158_v12 = vld [vmem:[#allocation7 + $0x330] ss:$12 sps:$4 sm:$0xff]  }
 0x180   :  { %4423 = vmatpush2.bf16.msra.mxu1 %v6113_v37  ;;  %4381 = vmatprep.subr.bf16.mxu0 %v6118_v45  ;;  %v6161_v37 = vld [vmem:[#allocation7 + $0x4b0] ss:$12 sps:$4 sm:$0xff]  }
 0x181   :  { %4424 = vmatprep.subr.bf16.mxu1 %v6121_v47  ;;  %v6166_v45 = vld [vmem:[#allocation7 + $0x31c] ss:$12 sps:$4 sm:$0xff]   ;;  %v6164_v47 = vld [vmem:[#allocation7 + $0x318] ss:$12 sps:$4 sm:$0xff]  }
 0x183   :  { %4382 = vmatpush2.bf16.msra.mxu0 %v6116_v49  ;;  %v6172_v49 = vld [vmem:[#allocation7 + $0x304] ss:$12 sps:$4 sm:$0xff]  }
 0x184   :  { %4425 = vmatpush2.bf16.msra.mxu1 %v6119_v50  ;;  %4383 = vmatprep.subr.bf16.mxu0 %v6124_v51  ;;  %v6175_v50 = vld [vmem:[#allocation7 + $0x484] ss:$12 sps:$4 sm:$0xff]   ;;  %v6170_v51 = vld [vmem:[#allocation7 + $0x300] ss:$12 sps:$4 sm:$0xff]  }
 0x185   :  { %4426 = vmatprep.subr.bf16.mxu1 %v6127_v53  ;;  %v6178_v53 = vld [vmem:[#allocation7 + $0x46c] ss:$12 sps:$4 sm:$0xff]  }
 0x187   :  { %4384 = vmatpush2.bf16.msra.mxu0 %v6122_v55  ;;  %v6181_v55 = vld [vmem:[#allocation7 + $0x5ec] ss:$12 sps:$4 sm:$0xff]  }
 0x188   :  { %4427 = vmatpush2.bf16.msra.mxu1 %v6125_v43  ;;  %4439 = vmatprep.subr.bf16.mxu0 %v6130_v57  ;;  %v6176_v43 = vld [vmem:[#allocation7 + $0x468] ss:$12 sps:$4 sm:$0xff]  }
 0x189   :  { %4482 = vmatprep.subr.bf16.mxu1 %v6133_v59  ;;  %v6179_v57 = vld [vmem:[#allocation7 + $0x5e8] ss:$12 sps:$4 sm:$0xff]  }
 0x18a   :  { %v6638_v7 = vpop.f32.mrf.mxu0  ;;  %4386 = vmatmul.mubr.bf16.vlgmr.msra.gmra.mxu0 %v6596_v0  ;;  %v6184_v59 = vld [vmem:[#allocation7 + $0x454] ss:$12 sps:$4 sm:$0xff]  }
 0x18b   :  { %4429 = vmatmul.mubr.bf16.vlgmr.msra.gmra.mxu1 %v6635_v34  ;;  %4440 = vmatpush1.bf16.msra.mxu0 %v6128_v61  ;;  %v6187_v61 = vld [vmem:[#allocation7 + $0x5d4] ss:$12 sps:$4 sm:$0xff]  }
 0x18c   :  { %4483 = vmatpush1.bf16.msra.mxu1 %v6131_v44  ;;  %v2072_v54 = vpop.f32.mrf.mxu0  ;;  %4441 = vmatprep.subr.bf16.mxu0 %v6136_v2  ;;  %v6182_v2 = vld [vmem:[#allocation7 + $0x450] ss:$12 sps:$4 sm:$0xff]  }
 0x18d   :  { %v2073_v10 = vadd.f32 %v2072_v54, %v387_v3  ;;  %4484 = vmatprep.subr.bf16.mxu1 %v6139_v5  ;;  %v6185_v5 = vld [vmem:[#allocation7 + $0x5d0] ss:$12 sps:$4 sm:$0xff]  }
 0x18e   :  { %v6644_v24 = vpop.f32.mrf.mxu0  ;;  %v6193_v54 = vld [vmem:[#allocation7 + $0x5bc] ss:$12 sps:$4 sm:$0xff]  }
 0x18f   :  { %4442 = vmatpush1.bf16.msra.mxu0 %v6134_v4  ;;  %v2116_v18 = vadd.f32 %v2115_v6, %v2073_v10  ;;  %v6190_v6 = vld [vmem:[#allocation7 + $0x43c] ss:$12 sps:$4 sm:$0xff]  }
 0x190   :  { %4485 = vmatpush1.bf16.msra.mxu1 %v6137_v8  ;;  %v2076_v16 = vpop.f32.mrf.mxu0  ;;  %4443 = vmatprep.subr.bf16.mxu0 %v6142_v9 }
 0x191   :  { %v2077_v19 = vadd.f32 %v2076_v16, %v387_v3  ;;  %4486 = vmatprep.subr.bf16.mxu1 %v6145_v11  ;;  %v2385_v31 = vmax.f32 %v2116_v18, 0.0  ;;  %v6188_v11 = vld [vmem:[#allocation7 + $0x438] ss:$12 sps:$4 sm:$0xff]  }
 0x192   :  { %v6196_v16 = vld [vmem:[#allocation7 + $0x424] ss:$12 sps:$4 sm:$0xff]  }
 0x193   :  { %v2120_v27 = vadd.f32 %v2119_v22, %v2077_v19  ;;  %4444 = vmatpush1.bf16.msra.mxu0 %v6140_v14  ;;  %v6191_v14 = vld [vmem:[#allocation7 + $0x5b8] ss:$12 sps:$4 sm:$0xff]   ;;  %v390_v22 = vsub.s32 6, %v6582_v20 }
 0x194   :  { %4487 = vmatpush1.bf16.msra.mxu1 %v6143_v15  ;;  %4445 = vmatprep.subr.bf16.mxu0 %v6148_v17  ;;  %v6199_v19 = vld [vmem:[#allocation7 + $0x5a4] ss:$12 sps:$4 sm:$0xff]  }
 0x195   :  { %v2397_v32 = vmax.f32 %v2120_v27, 0.0  ;;  %4488 = vmatprep.subr.bf16.mxu1 %v6151_v21  ;;  %v382_v21 = vsub.s32 4, %v6582_v20 }
 0x197   :  { %4446 = vmatpush1.bf16.msra.mxu0 %v6146_v26  ;;  %v6646_v40 = vpack.c.bf16 %v2397_v32, %v2385_v31  ;;  %v6202_v31 = vld [vmem:[#allocation7 + $0x40c] ss:$12 sps:$4 sm:$0xff]  }
 0x198   :  { %4489 = vmatpush1.bf16.msra.mxu1 %v6149_v28  ;;  %4447 = vmatprep.subr.bf16.mxu0 %v6154_v30  ;;  %v6194_v28 = vld [vmem:[#allocation7 + $0x420] ss:$12 sps:$4 sm:$0xff]  }
 0x199   :  { %4471 = vmatprep.mubr.bf16.mxu0 %v6646_v40  ;;  %4490 = vmatprep.subr.bf16.mxu1 %v6157_v38  ;;  %v6197_v30 = vld [vmem:[#allocation7 + $0x5a0] ss:$12 sps:$4 sm:$0xff]   ;;  %v6200_v38 = vld [vmem:[#allocation7 + $0x408] ss:$12 sps:$4 sm:$0xff]  }
 0x19b   :  { %4448 = vmatpush1.bf16.msra.mxu0 %v6152_v36 }
 0x19c   :  { %4491 = vmatpush1.bf16.msra.mxu1 %v6155_v39  ;;  %4449 = vmatprep.subr.bf16.mxu0 %v6160_v41  ;;  %v6205_v39 = vld [vmem:[#allocation7 + $0x58c] ss:$12 sps:$4 sm:$0xff]   ;;  %v6203_v41 = vld [vmem:[#allocation7 + $0x588] ss:$12 sps:$4 sm:$0xff]  }
 0x19d   :  { %4492 = vmatprep.subr.bf16.mxu1 %v6163_v42 }
 0x19f   :  { %4450 = vmatpush1.bf16.msra.mxu0 %v6158_v12  ;;  %v6208_v12 = vld [vmem:[#allocation7 + $0x3f4] ss:$12 sps:$4 sm:$0xff]  }
 0x1a0   :  { %4493 = vmatpush1.bf16.msra.mxu1 %v6161_v37  ;;  %4451 = vmatprep.subr.bf16.mxu0 %v6166_v45  ;;  %v6211_v37 = vld [vmem:[#allocation7 + $0x574] ss:$12 sps:$4 sm:$0xff]   ;;  %v383_v45 = vrot.slane %v6416_v60, %v382_v21  ;;  %v6256_v21 = vld [vmem:[#allocation7 + $0x7e4] ss:$12 sps:$4 sm:$0xff]  }
 0x1a1   :  { %4494 = vmatprep.subr.bf16.mxu1 %v6169_v46  ;;  %v391_v46 = vrot.slane %v6416_v60, %v390_v22  ;;  %v6223_v60 = vld [vmem:[#allocation7 + $0x544] ss:$12 sps:$4 sm:$0xff]   ;;  %v6233_v22 = vld [vmem:[#allocation7 + $0x660] ss:$12 sps:$4 sm:$0xff]  }
 0x1a3   :  { %4452 = vmatpush1.bf16.msra.mxu0 %v6164_v47  ;;  %v6206_v47 = vld [vmem:[#allocation7 + $0x3f0] ss:$12 sps:$4 sm:$0xff]  }
 0x1a4   :  { %4495 = vmatpush1.bf16.msra.mxu1 %v6167_v48  ;;  %4453 = vmatprep.subr.bf16.mxu0 %v6172_v49  ;;  %v2075_v48 = vadd.f32 %v6644_v24, %v383_v45  ;;  %v6209_v49 = vld [vmem:[#allocation7 + $0x570] ss:$12 sps:$4 sm:$0xff]  }
 0x1a5   :  { %4496 = vmatprep.subr.bf16.mxu1 %v6175_v50  ;;  %v6214_v50 = vld [vmem:[#allocation7 + $0x3dc] ss:$12 sps:$4 sm:$0xff]  }
 0x1a7   :  { %4454 = vmatpush1.bf16.msra.mxu0 %v6170_v51 }
 0x1a8   :  { %4497 = vmatpush1.bf16.msra.mxu1 %v6173_v52  ;;  %4455 = vmatprep.subr.bf16.mxu0 %v6178_v53  ;;  %v6217_v52 = vld [vmem:[#allocation7 + $0x55c] ss:$12 sps:$4 sm:$0xff]   ;;  %v2071_v53 = vadd.f32 %v6638_v7, %v383_v45  ;;  %v6259_v45 = vld [vmem:[#allocation7 + $0x604] ss:$12 sps:$4 sm:$0xff]  }
 0x1a9   :  { %4498 = vmatprep.subr.bf16.mxu1 %v6181_v55 }
 0x1aa   :  { %v6655_v1 = vpop.f32.mrf.mxu0 }
 0x1ab   :  { %v6653_v44 = vpop.f32.mrf.mxu1  ;;  %4456 = vmatpush2.bf16.msra.mxu0 %v6176_v43  ;;  %v2118_v43 = vadd.f32 %v6642_v13, %v2075_v48  ;;  %v6238_v13 = vld [vmem:[#allocation7 + $0x82c] ss:$12 sps:$4 sm:$0xff]  }
 0x1ac   :  { %4499 = vmatpush2.bf16.msra.mxu1 %v6179_v57  ;;  %v2201_v4 = vpop.f32.mrf.mxu0  ;;  %4457 = vmatprep.subr.bf16.mxu0 %v6184_v59  ;;  %v2157_v55 = vadd.f32 %v6653_v44, %v391_v46  ;;  %v6215_v57 = vld [vmem:[#allocation7 + $0x558] ss:$12 sps:$4 sm:$0xff]   ;;  %v6221_v44 = vld [vmem:[#allocation7 + $0x540] ss:$12 sps:$4 sm:$0xff]  }
 0x1ad   :  { %v2158_v3 = vpop.f32.mrf.mxu1  ;;  %4500 = vmatprep.subr.bf16.mxu1 %v6187_v61  ;;  %v6220_v59 = vld [vmem:[#allocation7 + $0x3c4] ss:$12 sps:$4 sm:$0xff]   ;;  %v2396_v7 = vmax.f32 %v2118_v43, 0.0  ;;  %v6257_v48 = vld [vmem:[#allocation7 + $0x600] ss:$12 sps:$4 sm:$0xff]  }
 0x1ae   :  { %v2159_v8 = vadd.f32 %v2158_v3, %v395_v33  ;;  %v2203_v10 = vpop.f32.mrf.mxu0  ;;  %v2200_v61 = vadd.f32 %v6655_v1, %v2157_v55  ;;  %v6226_v3 = vld [vmem:[#allocation7 + $0x6ac] ss:$12 sps:$4 sm:$0xff]   ;;  %v6236_v1 = vld [vmem:[#allocation7 + $0x828] ss:$12 sps:$4 sm:$0xff]  }
 0x1af   :  { %v2160_v9 = vpop.f32.mrf.mxu1  ;;  %4458 = vmatpush2.bf16.msra.mxu0 %v6182_v2  ;;  %v6218_v2 = vld [vmem:[#allocation7 + $0x3c0] ss:$12 sps:$4 sm:$0xff]   ;;  %v6679_v55 = vld [vmem:[%s6734_s2 + $0x8] sm:$0xf]  ;;  %v6284_v43 = vld [vmem:[#allocation7 + $0x8e8] ss:$12 sps:$4 sm:$0xff]  }
 0x1b0   :  { %4501 = vmatpush2.bf16.msra.mxu1 %v6185_v5  ;;  %4459 = vmatprep.subr.bf16.mxu0 %v6190_v6  ;;  %v2202_v17 = vadd.f32 %v2201_v4, %v2159_v8  ;;  %v2205_v26 = vpop.f32.mrf.mxu0  ;;  %v2161_v51 = vadd.f32 %v2160_v9, %v391_v46  ;;  %v2386_v6 = vmax.f32 %v2200_v61, 0.0  ;;  %v6224_v8 = vld [vmem:[#allocation7 + $0x6a8] ss:$12 sps:$4 sm:$0xff]   ;;  %v6272_v46 = vld [vmem:[#allocation7 + $0x798] ss:$12 sps:$4 sm:$0xff]  }
 0x1b1   :  { %v2162_v15 = vpop.f32.mrf.mxu1  ;;  %4502 = vmatprep.subr.bf16.mxu1 %v6193_v54 }
 0x1b2   :  { %v2163_v18 = vadd.f32 %v2162_v15, %v395_v33  ;;  %v2387_v32 = vmax.f32 %v2202_v17, 0.0  ;;  %v2204_v24 = vadd.f32 %v2203_v10, %v2161_v51  ;;  %v2114_v33 = vadd.f32 %v6633_v62, %v2071_v53  ;;  %v6229_v62 = vld [vmem:[#allocation7 + $0x694] ss:$12 sps:$4 sm:$0xff]   ;;  %v6242_v15 = vld [vmem:[#allocation7 + $0x810] ss:$12 sps:$4 sm:$0xff]  }
 0x1b3   :  { %4460 = vmatpush2.bf16.msra.mxu0 %v6188_v11  ;;  %v6244_v10 = vld [vmem:[#allocation7 + $0x814] ss:$12 sps:$4 sm:$0xff]   ;;  %v6227_v11 = vld [vmem:[#allocation7 + $0x690] ss:$12 sps:$4 sm:$0xff]   ;;  %v6230_v17 = vld [vmem:[#allocation7 + $0x678] ss:$12 sps:$4 sm:$0xff]  }
 0x1b4   :  { %v2206_v27 = vadd.f32 %v2205_v26, %v2163_v18  ;;  %4503 = vmatpush2.bf16.msra.mxu1 %v6191_v14  ;;  %4461 = vmatprep.subr.bf16.mxu0 %v6196_v16  ;;  %v2398_v4 = vmax.f32 %v2204_v24, 0.0  ;;  %v2384_v5 = vmax.f32 %v2114_v33, 0.0  ;;  %v6232_v14 = vld [vmem:[#allocation7 + $0x67c] ss:$12 sps:$4 sm:$0xff]   ;;  %v6235_v18 = vld [vmem:[#allocation7 + $0x664] ss:$12 sps:$4 sm:$0xff]  }
 0x1b5   :  { %4504 = vmatprep.subr.bf16.mxu1 %v6199_v19  ;;  %v6250_v16 = vld [vmem:[#allocation7 + $0x7fc] ss:$12 sps:$4 sm:$0xff]   ;;  %v6248_v19 = vld [vmem:[#allocation7 + $0x7f8] ss:$12 sps:$4 sm:$0xff]  }
 0x1b6   :  { %v2399_v36 = vmax.f32 %v2206_v27, 0.0  ;;  %v6668_v54 = vpack.c.bf16 %v2396_v7, %v2384_v5  ;;  %v6670_v9 = vpack.c.bf16 %v2398_v4, %v2386_v6  ;;  %v6241_v26 = vld [vmem:[#allocation7 + $0x64c] ss:$12 sps:$4 sm:$0xff]   ;;  %v6263_v53 = vld [vmem:[#allocation7 + $0x768] ss:$12 sps:$4 sm:$0xff]  }
 0x1b7   :  { %4462 = vmatpush2.bf16.msra.mxu0 %v6194_v28  ;;  %v6254_v27 = vld [vmem:[#allocation7 + $0x7e0] ss:$12 sps:$4 sm:$0xff]   ;;  %v6269_v33 = vld [vmem:[#allocation7 + $0x750] ss:$12 sps:$4 sm:$0xff]   ;;  %v6275_v5 = vld [vmem:[#allocation7 + $0x738] ss:$12 sps:$4 sm:$0xff]  }
 0x1b8   :  { %v6659_v42 = vpack.c.bf16 %v2399_v36, %v2387_v32  ;;  %4505 = vmatpush2.bf16.msra.mxu1 %v6197_v30  ;;  %4463 = vmatprep.subr.bf16.mxu0 %v6202_v31  ;;  %v6262_v28 = vld [vmem:[#allocation7 + $0x7cc] ss:$12 sps:$4 sm:$0xff]   ;;  %v6239_v30 = vld [vmem:[#allocation7 + $0x648] ss:$12 sps:$4 sm:$0xff]   ;;  %v6290_v7 = vld [vmem:[#allocation7 + $0x8d0] ss:$12 sps:$4 sm:$0xff]  }
 0x1b9   :  { %4506 = vmatprep.subr.bf16.mxu1 %v6205_v39  ;;  %v6247_v31 = vld [vmem:[#allocation7 + $0x634] ss:$12 sps:$4 sm:$0xff]   ;;  %v6253_v39 = vld [vmem:[#allocation7 + $0x61c] ss:$12 sps:$4 sm:$0xff]   ;;  %v6286_v51 = vld [vmem:[#allocation7 + $0x8ec] ss:$12 sps:$4 sm:$0xff]  }
 0x1ba   :  { %4514 = vmatprep.mubr.bf16.mxu1 %v6659_v42  ;;  %v6260_v32 = vld [vmem:[#allocation7 + $0x7c8] ss:$12 sps:$4 sm:$0xff]  }
 0x1bb   :  { %4464 = vmatpush2.bf16.msra.mxu0 %v6200_v38  ;;  %v6268_v36 = vld [vmem:[#allocation7 + $0x7b4] ss:$12 sps:$4 sm:$0xff]   ;;  %v6245_v38 = vld [vmem:[#allocation7 + $0x630] ss:$12 sps:$4 sm:$0xff]  }
 0x1bc   :  { %4507 = vmatpush2.bf16.msra.mxu1 %v6203_v41  ;;  %4465 = vmatprep.subr.bf16.mxu0 %v6208_v12  ;;  %v6266_v41 = vld [vmem:[#allocation7 + $0x7b0] ss:$12 sps:$4 sm:$0xff]  }
 0x1bd   :  { %4508 = vmatprep.subr.bf16.mxu1 %v6211_v37  ;;  %v6274_v12 = vld [vmem:[#allocation7 + $0x79c] ss:$12 sps:$4 sm:$0xff]   ;;  %v6251_v37 = vld [vmem:[#allocation7 + $0x618] ss:$12 sps:$4 sm:$0xff]  }
 0x1bf   :  { %4466 = vmatpush2.bf16.msra.mxu0 %v6206_v47  ;;  %v6280_v47 = vld [vmem:[#allocation7 + $0x784] ss:$12 sps:$4 sm:$0xff]  }
 0x1c0   :  { %4509 = vmatpush2.bf16.msra.mxu1 %v6209_v49  ;;  %4467 = vmatprep.subr.bf16.mxu0 %v6214_v50  ;;  %v6265_v49 = vld [vmem:[#allocation7 + $0x76c] ss:$12 sps:$4 sm:$0xff]  }
 0x1c1   :  { %4510 = vmatprep.subr.bf16.mxu1 %v6217_v52  ;;  %v6278_v50 = vld [vmem:[#allocation7 + $0x780] ss:$12 sps:$4 sm:$0xff]  }
 0x1c3   :  { %4468 = vmatpush2.bf16.msra.mxu0 %v6212_v56  ;;  %v6271_v56 = vld [vmem:[#allocation7 + $0x754] ss:$12 sps:$4 sm:$0xff]  }
 0x1c4   :  { %4511 = vmatpush2.bf16.msra.mxu1 %v6215_v57  ;;  %4469 = vmatprep.subr.bf16.mxu0 %v6220_v59  ;;  %v403_v57 = vrot.slane %v6679_v55, %v6599_v63  ;;  %v6292_v59 = vld [vmem:[#allocation7 + $0x8d4] ss:$12 sps:$4 sm:$0xff]  }
 0x1c5   :  { %4512 = vmatprep.subr.bf16.mxu1 %v6223_v60 }
 0x1c7   :  { %4470 = vmatpush2.bf16.msra.mxu0 %v6218_v2  ;;  %v6277_v2 = vld [vmem:[#allocation7 + $0x73c] ss:$12 sps:$4 sm:$0xff]  }
 0x1c8   :  { %4513 = vmatpush2.bf16.msra.mxu1 %v6221_v44  ;;  %4525 = vmatprep.subr.bf16.mxu0 %v6226_v3  ;;  %v6298_v3 = vld [vmem:[#allocation7 + $0x8bc] ss:$12 sps:$4 sm:$0xff]  }
 0x1c9   :  { %4568 = vmatprep.subr.bf16.mxu1 %v6238_v13 }
 0x1ca   :  { %4472 = vmatmul.mubr.bf16.vlgmr.msra.gmra.mxu0 %v6668_v54 }
 0x1cb   :  { %4515 = vmatmul.mubr.bf16.vlgmr.msra.gmra.mxu1 %v6670_v9  ;;  %4526 = vmatpush1.bf16.msra.mxu0 %v6224_v8  ;;  %v6674_v52 = vpop.f32.mrf.mxu1  ;;  %v6283_v8 = vld [vmem:[#allocation7 + $0x724] ss:$12 sps:$4 sm:$0xff]  }
 0x1cc   :  { %4527 = vmatprep.subr.bf16.mxu0 %v6229_v62  ;;  %4569 = vmatpush1.bf16.msra.mxu1 %v6236_v1  ;;  %v6296_v62 = vld [vmem:[#allocation7 + $0x8b8] ss:$12 sps:$4 sm:$0xff]  }
 0x1cd   :  { %4570 = vmatprep.subr.bf16.mxu1 %v6244_v10  ;;  %v2287_v24 = vpop.f32.mrf.mxu1 }
 0x1cf   :  { %4528 = vmatpush1.bf16.msra.mxu0 %v6227_v11  ;;  %v2289_v4 = vpop.f32.mrf.mxu1  ;;  %v6304_v11 = vld [vmem:[#allocation7 + $0x8a4] ss:$12 sps:$4 sm:$0xff]  }
 0x1d0   :  { %4529 = vmatprep.subr.bf16.mxu0 %v6232_v14  ;;  %4571 = vmatpush1.bf16.msra.mxu1 %v6242_v15 }
 0x1d1   :  { %4572 = vmatprep.subr.bf16.mxu1 %v6250_v16  ;;  %v2291_v14 = vpop.f32.mrf.mxu1  ;;  %v6281_v16 = vld [vmem:[#allocation7 + $0x720] ss:$12 sps:$4 sm:$0xff]  }
 0x1d3   :  { %4530 = vmatpush1.bf16.msra.mxu0 %v6230_v17  ;;  %v6289_v17 = vld [vmem:[#allocation7 + $0x70c] ss:$12 sps:$4 sm:$0xff]  }
 0x1d4   :  { %4531 = vmatprep.subr.bf16.mxu0 %v6235_v18  ;;  %4573 = vmatpush1.bf16.msra.mxu1 %v6248_v19  ;;  %v6302_v18 = vld [vmem:[#allocation7 + $0x8a0] ss:$12 sps:$4 sm:$0xff]  }
 0x1d5   :  { %4574 = vmatprep.subr.bf16.mxu1 %v6256_v21 }
 0x1d7   :  { %4532 = vmatpush1.bf16.msra.mxu0 %v6233_v22  ;;  %v6310_v22 = vld [vmem:[#allocation7 + $0x88c] ss:$12 sps:$4 sm:$0xff]  }
 0x1d8   :  { %4533 = vmatprep.subr.bf16.mxu0 %v6241_v26  ;;  %4575 = vmatpush1.bf16.msra.mxu1 %v6254_v27  ;;  %v6287_v27 = vld [vmem:[#allocation7 + $0x708] ss:$12 sps:$4 sm:$0xff]  }
 0x1d9   :  { %4576 = vmatprep.subr.bf16.mxu1 %v6262_v28  ;;  %v6295_v28 = vld [vmem:[#allocation7 + $0x6f4] ss:$12 sps:$4 sm:$0xff]  }
 0x1db   :  { %4534 = vmatpush1.bf16.msra.mxu0 %v6239_v30  ;;  %v6308_v30 = vld [vmem:[#allocation7 + $0x888] ss:$12 sps:$4 sm:$0xff]  }
 0x1dc   :  { %4535 = vmatprep.subr.bf16.mxu0 %v6247_v31  ;;  %4577 = vmatpush1.bf16.msra.mxu1 %v6260_v32  ;;  %v6315_v31 = vld [vmem:[#allocation7 + $0x874] ss:$12 sps:$4 sm:$0xff]   ;;  %v399_v32 = vrot.slane %v6679_v55, %v6590_v25 }
 0x1dd   :  { %4578 = vmatprep.subr.bf16.mxu1 %v6268_v36  ;;  %v6293_v36 = vld [vmem:[#allocation7 + $0x6f0] ss:$12 sps:$4 sm:$0xff]  }
 0x1df   :  { %4536 = vmatpush1.bf16.msra.mxu0 %v6245_v38 }
 0x1e0   :  { %4537 = vmatprep.subr.bf16.mxu0 %v6253_v39  ;;  %4579 = vmatpush1.bf16.msra.mxu1 %v6266_v41  ;;  %v6301_v39 = vld [vmem:[#allocation7 + $0x6dc] ss:$12 sps:$4 sm:$0xff]  }
 0x1e1   :  { %4580 = vmatprep.subr.bf16.mxu1 %v6274_v12  ;;  %v6313_v41 = vld [vmem:[#allocation7 + $0x870] ss:$12 sps:$4 sm:$0xff]  }
 0x1e2   :  { %v6320_v12 = vld [vmem:[#allocation7 + $0x85c] ss:$12 sps:$4 sm:$0xff]  }
 0x1e3   :  { %4538 = vmatpush1.bf16.msra.mxu0 %v6251_v37 }
 0x1e4   :  { %4539 = vmatprep.subr.bf16.mxu0 %v6259_v45  ;;  %4581 = vmatpush1.bf16.msra.mxu1 %v6272_v46  ;;  %v6299_v45 = vld [vmem:[#allocation7 + $0x6d8] ss:$12 sps:$4 sm:$0xff]  }
 0x1e5   :  { %4582 = vmatprep.subr.bf16.mxu1 %v6280_v47  ;;  %v6307_v47 = vld [vmem:[#allocation7 + $0x6c4] ss:$12 sps:$4 sm:$0xff]  }
 0x1e7   :  { %4540 = vmatpush1.bf16.msra.mxu0 %v6257_v48  ;;  %v6318_v48 = vld [vmem:[#allocation7 + $0x858] ss:$12 sps:$4 sm:$0xff]  }
 0x1e8   :  { %4541 = vmatprep.subr.bf16.mxu0 %v6265_v49  ;;  %4583 = vmatpush1.bf16.msra.mxu1 %v6278_v50  ;;  %v6325_v49 = vld [vmem:[#allocation7 + $0x844] ss:$12 sps:$4 sm:$0xff]  }
 0x1e9   :  { %4584 = vmatprep.subr.bf16.mxu1 %v6286_v51  ;;  %v6305_v51 = vld [vmem:[#allocation7 + $0x6c0] ss:$12 sps:$4 sm:$0xff]  }
 0x1ea   :  { %v2242_v60 = vpop.f32.mrf.mxu0 }
 0x1eb   :  { %4542 = vmatpush2.bf16.msra.mxu0 %v6263_v53  ;;  %v2243_v37 = vadd.f32 %v2242_v60, %v399_v32 }
 0x1ec   :  { %v2244_v61 = vpop.f32.mrf.mxu0  ;;  %4543 = vmatprep.subr.bf16.mxu0 %v6271_v56  ;;  %4585 = vmatpush2.bf16.msra.mxu1 %v6284_v43  ;;  %v6311_v56 = vld [vmem:[#allocation7 + $0x170] ss:$12 sps:$4 sm:$0xff]   ;;  %v6323_v43 = vld [vmem:[#allocation7 + $0x840] ss:$12 sps:$4 sm:$0xff]  }
 0x1ed   :  { %v2245_v44 = vadd.f32 %v2244_v61, %v403_v57  ;;  %4586 = vmatprep.subr.bf16.mxu1 %v6292_v59  ;;  %v2286_v50 = vadd.f32 %v6674_v52, %v2243_v37  ;;  %v411_v52 = vrot.slane %v6679_v55, %v378_v23  ;;  %v407_v61 = vrot.slane %v6679_v55, %v6624_v35  ;;  %v6337_v37 = vld [vmem:[#allocation7 + $0xe0] ss:$12 sps:$4 sm:$0xff]  }
 0x1ee   :  { %v2246_v13 = vpop.f32.mrf.mxu0 }
 0x1ef   :  { %4544 = vmatpush2.bf16.msra.mxu0 %v6269_v33  ;;  %v2288_v1 = vadd.f32 %v2287_v24, %v2245_v44  ;;  %v2247_v38 = vadd.f32 %v2246_v13, %v399_v32  ;;  %v2388_v59 = vmax.f32 %v2286_v50, 0.0  ;;  %v6312_v24 = vld [vmem:[#allocation7 + $0xb0] ss:$12 sps:$4 sm:$0xff]   ;;  %v6316_v33 = vld [vmem:[#allocation7 + $0x158] ss:$12 sps:$4 sm:$0xff]  }
 0x1f0   :  { %v2248_v6 = vpop.f32.mrf.mxu0  ;;  %4545 = vmatprep.subr.bf16.mxu0 %v6277_v2  ;;  %4587 = vmatpush2.bf16.msra.mxu1 %v6290_v7  ;;  %v6317_v44 = vld [vmem:[#allocation7 + $0x98] ss:$12 sps:$4 sm:$0xff]   ;;  %v6321_v13 = vld [vmem:[#allocation7 + $0x140] ss:$12 sps:$4 sm:$0xff]   ;;  %v6343_v50 = vld [vmem:[#allocation7 + $0x8] ss:$12 sps:$4 sm:$0xff]  }
 0x1f1   :  { %v2249_v10 = vadd.f32 %v2248_v6, %v403_v57  ;;  %4588 = vmatprep.subr.bf16.mxu1 %v6298_v3  ;;  %v2389_v19 = vmax.f32 %v2288_v1, 0.0  ;;  %v2290_v46 = vadd.f32 %v2289_v4, %v2247_v38  ;;  %v6328_v57 = vld [vmem:[#allocation7 + $0x2f0] ss:$12 sps:$4 sm:$0xff]   ;;  %v6326_v1 = vld [vmem:[#allocation7 + $0x128] ss:$12 sps:$4 sm:$0xff]  }
 0x1f2   :  { %v6333_v38 = vld [vmem:[#allocation7 + $0xf8] ss:$12 sps:$4 sm:$0xff]  }
 0x1f3   :  { %v2292_v15 = vadd.f32 %v2291_v14, %v2249_v10  ;;  %4546 = vmatpush2.bf16.msra.mxu0 %v6275_v5  ;;  %v2400_v53 = vmax.f32 %v2290_v46, 0.0  ;;  %v6339_v46 = vld [vmem:[#allocation7 + $0x20] ss:$12 sps:$4 sm:$0xff]  }
 0x1f4   :  { %4547 = vmatprep.subr.bf16.mxu0 %v6283_v8  ;;  %4589 = vmatpush2.bf16.msra.mxu1 %v6296_v62  ;;  %v6322_v62 = vld [vmem:[#allocation7 + $0x80] ss:$12 sps:$4 sm:$0xff]  }
 0x1f5   :  { %v2401_v21 = vmax.f32 %v2292_v15, 0.0  ;;  %4590 = vmatprep.subr.bf16.mxu1 %v6304_v11  ;;  %v6689_v60 = vpack.c.bf16 %v2400_v53, %v2388_v59  ;;  %v6345_v53 = vld [vmem:[#allocation7 + $0x1d0] ss:$12 sps:$4 sm:$0xff]   ;;  %v6349_v59 = vld [vmem:[#allocation7 + $0x1b8] ss:$12 sps:$4 sm:$0xff]  }
 0x1f7   :  { %4548 = vmatpush2.bf16.msra.mxu0 %v6281_v16  ;;  %v6683_v26 = vpack.c.bf16 %v2401_v21, %v2389_v19  ;;  %v6329_v19 = vld [vmem:[#allocation7 + $0x110] ss:$12 sps:$4 sm:$0xff]  }
 0x1f8   :  { %4549 = vmatprep.subr.bf16.mxu0 %v6289_v17  ;;  %4591 = vmatpush2.bf16.msra.mxu1 %v6302_v18  ;;  %v6327_v17 = vld [vmem:[#allocation7 + $0x68] ss:$12 sps:$4 sm:$0xff]  }
 0x1f9   :  { %4557 = vmatprep.mubr.bf16.mxu0 %v6683_v26  ;;  %4592 = vmatprep.subr.bf16.mxu1 %v6310_v22 }
 0x1fb   :  { %4550 = vmatpush2.bf16.msra.mxu0 %v6287_v27 }
 0x1fc   :  { %4551 = vmatprep.subr.bf16.mxu0 %v6295_v28  ;;  %4593 = vmatpush2.bf16.msra.mxu1 %v6308_v30  ;;  %v6330_v30 = vld [vmem:[#allocation7 + $0x230] ss:$12 sps:$4 sm:$0xff]  }
 0x1fd   :  { %4594 = vmatprep.subr.bf16.mxu1 %v6315_v31  ;;  %v6331_v31 = vld [vmem:[#allocation7 + $0x50] ss:$12 sps:$4 sm:$0xff]  }
 0x1ff   :  { %4552 = vmatpush2.bf16.msra.mxu0 %v6293_v36  ;;  %v6332_v36 = vld [vmem:[#allocation7 + $0x2d8] ss:$12 sps:$4 sm:$0xff]  }
 0x200   :  { %4553 = vmatprep.subr.bf16.mxu0 %v6301_v39  ;;  %4595 = vmatpush2.bf16.msra.mxu1 %v6313_v41  ;;  %v6334_v39 = vld [vmem:[#allocation7 + $0x218] ss:$12 sps:$4 sm:$0xff]  }
 0x201   :  { %4596 = vmatprep.subr.bf16.mxu1 %v6320_v12  ;;  %v6335_v41 = vld [vmem:[#allocation7 + $0x38] ss:$12 sps:$4 sm:$0xff]   ;;  %v6336_v12 = vld [vmem:[#allocation7 + $0x2c0] ss:$12 sps:$4 sm:$0xff]  }
 0x203   :  { %4554 = vmatpush2.bf16.msra.mxu0 %v6299_v45  ;;  %v6338_v45 = vld [vmem:[#allocation7 + $0x200] ss:$12 sps:$4 sm:$0xff]  }
 0x204   :  { %4555 = vmatprep.subr.bf16.mxu0 %v6307_v47  ;;  %4597 = vmatpush2.bf16.msra.mxu1 %v6318_v48  ;;  %v6340_v47 = vld [vmem:[#allocation7 + $0x2a8] ss:$12 sps:$4 sm:$0xff]  }
 0x205   :  { %4598 = vmatprep.subr.bf16.mxu1 %v6325_v49  ;;  %v6341_v48 = vld [vmem:[#allocation7 + $0xc8] ss:$12 sps:$4 sm:$0xff]  }
 0x206   :  { %v6342_v49 = vld [vmem:[#allocation7 + $0x1e8] ss:$12 sps:$4 sm:$0xff]  }
 0x207   :  { %4556 = vmatpush2.bf16.msra.mxu0 %v6305_v51  ;;  %v6344_v51 = vld [vmem:[#allocation7 + $0x290] ss:$12 sps:$4 sm:$0xff]  }
 0x208   :  { %5457 = vmatprep.subr.bf16.mxu0 %v6311_v56  ;;  %4599 = vmatpush2.bf16.msra.mxu1 %v6323_v43  ;;  %v6347_v56 = vld [vmem:[#allocation7 + $0x3b0] ss:$12 sps:$4 sm:$0xff]   ;;  %v6348_v43 = vld [vmem:[#allocation7 + $0x278] ss:$12 sps:$4 sm:$0xff]  }
 0x209   :  { %5479 = vmatprep.subr.bf16.mxu1 %v6328_v57  ;;  %v6350_v57 = vld [vmem:[#allocation7 + $0x458] ss:$12 sps:$4 sm:$0xff]  }
 0x20a   :  { %v2371_v7 = vpop.f32.mrf.mxu0  ;;  %4558 = vmatmul.mubr.bf16.vlgmr.msra.gmra.mxu0 %v6689_v60 }
 0x20b   :  { %v2328_v2 = vpop.f32.mrf.mxu1  ;;  %5458 = vmatpush3.bf16.msra.mxu0 %v6312_v24  ;;  %4643 = vmatprep.mubr.bf16.mxu0 %v6604_v29  ;;  %v6351_v24 = vld [vmem:[#allocation7 + $0x398] ss:$12 sps:$4 sm:$0xff]  }
 0x20c   :  { %v2373_v4 = vpop.f32.mrf.mxu0  ;;  %5459 = vmatprep.subr.bf16.mxu0 %v6316_v33  ;;  %v2329_v20 = vadd.f32 %v2328_v2, %v407_v61  ;;  %v6352_v33 = vld [vmem:[#allocation7 + $0x260] ss:$12 sps:$4 sm:$0xff]  }
 0x20d   :  { %v2330_v3 = vpop.f32.mrf.mxu1  ;;  %v6355_v2 = vld [vmem:[#allocation7 + $0x380] ss:$12 sps:$4 sm:$0xff]  }
 0x20e   :  { %v2331_v5 = vadd.f32 %v2330_v3, %v411_v52  ;;  %v2375_v23 = vpop.f32.mrf.mxu0  ;;  %v2372_v15 = vadd.f32 %v2371_v7, %v2329_v20  ;;  %v6356_v7 = vld [vmem:[#allocation7 + $0x248] ss:$12 sps:$4 sm:$0xff]   ;;  %v6364_v20 = vld [vmem:[#allocation7 + $0x5d8] ss:$12 sps:$4 sm:$0xff]  }
 0x20f   :  { %v2332_v6 = vpop.f32.mrf.mxu1  ;;  %5460 = vmatpush3.bf16.msra.mxu0 %v6317_v44  ;;  %v6358_v44 = vld [vmem:[#allocation7 + $0x428] ss:$12 sps:$4 sm:$0xff]  }
 0x210   :  { %v2333_v8 = vadd.f32 %v2332_v6, %v407_v61  ;;  %5461 = vmatprep.subr.bf16.mxu0 %v6321_v13  ;;  %v2374_v10 = vadd.f32 %v2373_v4, %v2331_v5  ;;  %v2377_v29 = vpop.f32.mrf.mxu0  ;;  %v2390_v27 = vmax.f32 %v2372_v15, 0.0  ;;  %v6353_v61 = vld [vmem:[#allocation7 + $0x1a0] ss:$12 sps:$4 sm:$0xff]   ;;  %v6359_v3 = vld [vmem:[#allocation7 + $0x368] ss:$12 sps:$4 sm:$0xff]  }
 0x211   :  { %v2334_v55 = vpop.f32.mrf.mxu1  ;;  %v6360_v4 = vld [vmem:[#allocation7 + $0x5f0] ss:$12 sps:$4 sm:$0xff]   ;;  %v6365_v6 = vld [vmem:[#allocation7 + $0x3f8] ss:$12 sps:$4 sm:$0xff]  }
 0x212   :  { %v2376_v11 = vadd.f32 %v2375_v23, %v2333_v8  ;;  %v2335_v14 = vadd.f32 %v2334_v55, %v411_v52  ;;  %v2391_v21 = vmax.f32 %v2374_v10, 0.0  ;;  %v6354_v52 = vld [vmem:[#allocation7 + $0x440] ss:$12 sps:$4 sm:$0xff]   ;;  %v6362_v13 = vld [vmem:[#allocation7 + $0x530] ss:$12 sps:$4 sm:$0xff]  }
 0x213   :  { %5462 = vmatpush3.bf16.msra.mxu0 %v6322_v62  ;;  %v6363_v5 = vld [vmem:[#allocation7 + $0x350] ss:$12 sps:$4 sm:$0xff]   ;;  %v6366_v23 = vld [vmem:[#allocation7 + $0x518] ss:$12 sps:$4 sm:$0xff]   ;;  %v6368_v62 = vld [vmem:[#allocation7 + $0x5c0] ss:$12 sps:$4 sm:$0xff]  }
 0x214   :  { %v2378_v16 = vadd.f32 %v2377_v29, %v2335_v14  ;;  %v2402_v18 = vmax.f32 %v2376_v11, 0.0  ;;  %5463 = vmatprep.subr.bf16.mxu0 %v6326_v1  ;;  %v6367_v8 = vld [vmem:[#allocation7 + $0x338] ss:$12 sps:$4 sm:$0xff]   ;;  %v6369_v55 = vld [vmem:[#allocation7 + $0x3e0] ss:$12 sps:$4 sm:$0xff]  }
 0x215   :  { %v6370_v1 = vld [vmem:[#allocation7 + $0x500] ss:$12 sps:$4 sm:$0xff]   ;;  %v6372_v11 = vld [vmem:[#allocation7 + $0x5a8] ss:$12 sps:$4 sm:$0xff]   ;;  %v6376_v15 = vld [vmem:[#allocation7 + $0x590] ss:$12 sps:$4 sm:$0xff]  }
 0x216   :  { %v2403_v22 = vmax.f32 %v2378_v16, 0.0  ;;  %v6700_v32 = vpack.c.bf16 %v2402_v18, %v2390_v27  ;;  %v6371_v10 = vld [vmem:[#allocation7 + $0x320] ss:$12 sps:$4 sm:$0xff]   ;;  %v6373_v14 = vld [vmem:[#allocation7 + $0x3c8] ss:$12 sps:$4 sm:$0xff]  }
 0x217   :  { %5464 = vmatpush3.bf16.msra.mxu0 %v6327_v17  ;;  %v6378_v29 = vld [vmem:[#allocation7 + $0x770] ss:$12 sps:$4 sm:$0xff]   ;;  %v6380_v18 = vld [vmem:[#allocation7 + $0x578] ss:$12 sps:$4 sm:$0xff]   ;;  %v6384_v27 = vld [vmem:[#allocation7 + $0x560] ss:$12 sps:$4 sm:$0xff]  }
 0x218   :  { %v6698_v28 = vpack.c.bf16 %v2403_v22, %v2391_v21  ;;  %5465 = vmatprep.subr.bf16.mxu0 %v6329_v19  ;;  %v6377_v16 = vld [vmem:[#allocation7 + $0x4d0] ss:$12 sps:$4 sm:$0xff]   ;;  %v6382_v19 = vld [vmem:[#allocation7 + $0x758] ss:$12 sps:$4 sm:$0xff]  }
 0x219   :  { %v6379_v17 = vld [vmem:[#allocation7 + $0x6b0] ss:$12 sps:$4 sm:$0xff]   ;;  %v6381_v21 = vld [vmem:[#allocation7 + $0x4b8] ss:$12 sps:$4 sm:$0xff]  }
 0x21a   :  { %4600 = vmatprep.mubr.bf16.mxu1 %v6698_v28  ;;  %v6383_v22 = vld [vmem:[#allocation7 + $0x698] ss:$12 sps:$4 sm:$0xff]  }
 0x21b   :  { %4601 = vmatmul.mubr.bf16.vlgmr.msra.gmra.mxu1 %v6700_v32  ;;  %5466 = vmatpush3.bf16.msra.mxu0 %v6331_v31  ;;  %v6385_v31 = vld [vmem:[#allocation7 + $0x4a0] ss:$12 sps:$4 sm:$0xff]  }
 0x21c   :  { %5480 = vmatpush3.bf16.msra.mxu1 %v6330_v30  ;;  %4684 = vmatprep.mubr.bf16.mxu1 %v6620_v58  ;;  %v6346_v58 = vld [vmem:[#allocation7 + $0x470] ss:$12 sps:$4 sm:$0xff]   ;;  %v6386_v30 = vld [vmem:[#allocation7 + $0x740] ss:$12 sps:$4 sm:$0xff]  }
 0x21d   :  { %5481 = vmatprep.subr.bf16.mxu1 %v6332_v36  ;;  %5467 = vmatprep.subr.bf16.mxu0 %v6333_v38  ;;  %v6387_v36 = vld [vmem:[#allocation7 + $0x680] ss:$12 sps:$4 sm:$0xff]   ;;  %v6388_v38 = vld [vmem:[#allocation7 + $0x548] ss:$12 sps:$4 sm:$0xff]  }
 0x21f   :  { %5468 = vmatpush3.bf16.msra.mxu0 %v6335_v41  ;;  %v6391_v41 = vld [vmem:[#allocation7 + $0x668] ss:$12 sps:$4 sm:$0xff]  }
 0x220   :  { %5482 = vmatpush3.bf16.msra.mxu1 %v6334_v39  ;;  %5469 = vmatprep.subr.bf16.mxu0 %v6337_v37  ;;  %v6390_v39 = vld [vmem:[#allocation7 + $0x728] ss:$12 sps:$4 sm:$0xff]   ;;  %v6394_v37 = vld [vmem:[#allocation7 + $0x830] ss:$12 sps:$4 sm:$0xff]  }
 0x221   :  { %5483 = vmatprep.subr.bf16.mxu1 %v6336_v12  ;;  %v6392_v12 = vld [vmem:[#allocation7 + $0x8f0] ss:$12 sps:$4 sm:$0xff]  }
 0x223   :  { %5470 = vmatpush3.bf16.msra.mxu0 %v6339_v46  ;;  %v6396_v46 = vld [vmem:[#allocation7 + $0x8d8] ss:$12 sps:$4 sm:$0xff]  }
 0x224   :  { %5484 = vmatpush3.bf16.msra.mxu1 %v6338_v45  ;;  %5471 = vmatprep.subr.bf16.mxu0 %v6341_v48  ;;  %v6395_v45 = vld [vmem:[#allocation7 + $0x650] ss:$12 sps:$4 sm:$0xff]   ;;  %v6398_v48 = vld [vmem:[#allocation7 + $0x818] ss:$12 sps:$4 sm:$0xff]  }
 0x225   :  { %5485 = vmatprep.subr.bf16.mxu1 %v6340_v47  ;;  %v6397_v47 = vld [vmem:[#allocation7 + $0x6f8] ss:$12 sps:$4 sm:$0xff]  }
 0x227   :  { %5472 = vmatpush3.bf16.msra.mxu0 %v6343_v50  ;;  %v6400_v50 = vld [vmem:[#allocation7 + $0x8c0] ss:$12 sps:$4 sm:$0xff]  }
 0x228   :  { %5486 = vmatpush3.bf16.msra.mxu1 %v6342_v49  ;;  %5501 = vmatprep.subr.bf16.mxu0 %v6346_v58  ;;  %v6399_v49 = vld [vmem:[#allocation7 + $0x638] ss:$12 sps:$4 sm:$0xff]   ;;  %v6402_v58 = vld [vmem:[#allocation7 + $0x800] ss:$12 sps:$4 sm:$0xff]  }
 0x229   :  { %5487 = vmatprep.subr.bf16.mxu1 %v6344_v51  ;;  %v6401_v51 = vld [vmem:[#allocation7 + $0x6e0] ss:$12 sps:$4 sm:$0xff]  }
 0x22a   :  { %4644 = vmatmul.mubr.bf16.vlgmr.msra.gmra.mxu0 %v6596_v0  ;;  %v6357_v0 = vld [vmem:[#allocation7 + $0x188] ss:$12 sps:$4 sm:$0xff]  }
 0x22b   :  { %5502 = vmatpush3.bf16.msra.mxu0 %v6347_v56  ;;  %4725 = vmatprep.mubr.bf16.mxu0 %v6646_v40  ;;  %v6361_v40 = vld [vmem:[#allocation7 + $0x410] ss:$12 sps:$4 sm:$0xff]   ;;  %v6404_v56 = vld [vmem:[#allocation7 + $0x8a8] ss:$12 sps:$4 sm:$0xff]  }
 0x22c   :  { %5488 = vmatpush3.bf16.msra.mxu1 %v6345_v53  ;;  %5503 = vmatprep.subr.bf16.mxu0 %v6350_v57  ;;  %v6403_v53 = vld [vmem:[#allocation7 + $0x620] ss:$12 sps:$4 sm:$0xff]   ;;  %v6408_v57 = vld [vmem:[#allocation7 + $0x890] ss:$12 sps:$4 sm:$0xff]  }
 0x22d   :  { %5489 = vmatprep.subr.bf16.mxu1 %v6348_v43  ;;  %v6405_v43 = vld [vmem:[#allocation7 + $0x6c8] ss:$12 sps:$4 sm:$0xff]  }
 0x22f   :  { %5504 = vmatpush3.bf16.msra.mxu0 %v6351_v24  ;;  %v6410_v24 = vld [vmem:[#allocation7 + $0x878] ss:$12 sps:$4 sm:$0xff]  }
 0x230   :  { %5490 = vmatpush3.bf16.msra.mxu1 %v6349_v59  ;;  %5505 = vmatprep.subr.bf16.mxu0 %v6354_v52  ;;  %v6409_v59 = vld [vmem:[#allocation7 + $0x7d0] ss:$12 sps:$4 sm:$0xff]   ;;  %v6412_v52 = vld [vmem:[#allocation7 + $0x860] ss:$12 sps:$4 sm:$0xff]  }
 0x231   :  { %5491 = vmatprep.subr.bf16.mxu1 %v6352_v33  ;;  %v6411_v33 = vld [vmem:[#allocation7 + $0x7b8] ss:$12 sps:$4 sm:$0xff]  }
 0x233   :  { %5506 = vmatpush3.bf16.msra.mxu0 %v6355_v2  ;;  %v6414_v2 = vld [vmem:[#allocation7 + $0x848] ss:$12 sps:$4 sm:$0xff]  }
 0x234   :  { %5492 = vmatpush3.bf16.msra.mxu1 %v6353_v61  ;;  %5507 = vmatprep.subr.bf16.mxu0 %v6358_v44  ;;  %v6413_v61 = vld [vmem:[#allocation7 + $0x7a0] ss:$12 sps:$4 sm:$0xff]  }
 0x235   :  { %5493 = vmatprep.subr.bf16.mxu1 %v6356_v7  ;;  %v6415_v7 = vld [vmem:[#allocation7 + $0x788] ss:$12 sps:$4 sm:$0xff]  }
 0x237   :  { %5508 = vmatpush3.bf16.msra.mxu0 %v6359_v3 }
 0x238   :  { %5494 = vmatpush3.bf16.msra.mxu1 %v6357_v0  ;;  %5509 = vmatprep.subr.bf16.mxu0 %v6361_v40 }
 0x239   :  { %5523 = vmatprep.subr.bf16.mxu1 %v6360_v4 }
 0x23b   :  { %4685 = vmatmul.mubr.bf16.vlgmr.msra.gmra.mxu1 %v6635_v34  ;;  %5510 = vmatpush3.bf16.msra.mxu0 %v6363_v5  ;;  %v6374_v34 = vld [vmem:[#allocation7 + $0x4e8] ss:$12 sps:$4 sm:$0xff]   ;;  %v6718_v5 = vld [vmem:[%s6736_s4] sm:$0x7]  ;;  %s6513_s4 = smov [#allocation8]  }
 0x23c   :  { %5524 = vmatpush3.bf16.msra.mxu1 %v6362_v13  ;;  %4766 = vmatprep.mubr.bf16.mxu1 %v6659_v42  ;;  %v6375_v42 = vld [vmem:[#allocation7 + $0x308] ss:$12 sps:$4 sm:$0xff]   ;;  %s4868_s18 = sshll.u32 %s6513_s4, 4  ;;  %s4869_s18 = int_to_ptr.vmem [resolvable:$true] %s4868_s18 }
 0x23d   :  { %5525 = vmatprep.subr.bf16.mxu1 %v6364_v20  ;;  %5511 = vmatprep.subr.bf16.mxu0 %v6365_v6  ;;  %s6477_s19 = scalar_lea.vmem %s4869_s18, 768  ;;  %p6482_p2 = scmp.lt.s32.totalorder %s4869_s18, %s4869_s18 }
 0x23e   :  { %p6478_p1 = scmp.ne.s32.totalorder %s4869_s18, %s6477_s19  ;;  %p6483_p3 = scmp.lt.s32.totalorder %s6477_s19, %s6477_s19 }
 0x23f   :  { %5512 = vmatpush3.bf16.msra.mxu0 %v6367_v8 }
 0x240   :  { %5526 = vmatpush3.bf16.msra.mxu1 %v6366_v23  ;;  %5513 = vmatprep.subr.bf16.mxu0 %v6369_v55  ;;  %v2805_v23 = vrot.slane %v6718_v5, %v6590_v25  ;;  %p6484_p4 = por %p6483_p3, %p6482_p2 }
 0x241   :  { %5527 = vmatprep.subr.bf16.mxu1 %v6368_v62 }
 0x242   :  { %p6485_p5 = pnand %p6484_p4, %p6478_p1 }
 0x243   :  { %5514 = vmatpush3.bf16.msra.mxu0 %v6371_v10 }
 0x244   :  { %5528 = vmatpush3.bf16.msra.mxu1 %v6370_v1  ;;  %5515 = vmatprep.subr.bf16.mxu0 %v6373_v14 }
 0x245   :  { %5529 = vmatprep.subr.bf16.mxu1 %v6372_v11 }
 0x247   :  { %5516 = vmatpush3.bf16.msra.mxu0 %v6375_v42 }
 0x248   :  { %5530 = vmatpush3.bf16.msra.mxu1 %v6374_v34  ;;  %5545 = vmatprep.subr.bf16.mxu0 %v6378_v29 }
 0x249   :  { %5531 = vmatprep.subr.bf16.mxu1 %v6376_v15 }
 0x24a   :  { %4726 = vmatmul.mubr.bf16.vlgmr.msra.gmra.mxu0 %v6668_v54  ;;  %v6389_v54 = vld [vmem:[#allocation7 + $0x488] ss:$12 sps:$4 sm:$0xff]   ;;  %v4387_v44 = vpop.f32.mrf.mxu0 }
 0x24b   :  { %5546 = vmatpush3.bf16.msra.mxu0 %v6379_v17  ;;  %4807 = vmatprep.mubr.bf16.mxu0 %v6683_v26  ;;  %v6393_v26 = vld [vmem:[#allocation7 + $0x710] ss:$12 sps:$4 sm:$0xff]   ;;  %v4430_v4 = vpop.f32.mrf.mxu1  ;;  %v4388_v1 = vadd.f32 %v4387_v44, %v2805_v23 }
 0x24c   :  { %5532 = vmatpush3.bf16.msra.mxu1 %v6377_v16  ;;  %5547 = vmatprep.subr.bf16.mxu0 %v6382_v19  ;;  %v4389_v0 = vpop.f32.mrf.mxu0 }
 0x24d   :  { %5533 = vmatprep.subr.bf16.mxu1 %v6380_v18  ;;  %v4431_v42 = vadd.f32 %v4430_v4, %v4388_v1  ;;  %v2813_v4 = vrot.slane %v6718_v5, %v6624_v35 }
 0x24e   :  { %v4391_v3 = vpop.f32.mrf.mxu0 }
 0x24f   :  { %5548 = vmatpush3.bf16.msra.mxu0 %v6383_v22  ;;  %v4392_v15 = vadd.f32 %v4391_v3, %v2805_v23 }
 0x250   :  { %5534 = vmatpush3.bf16.msra.mxu1 %v6381_v21  ;;  %5549 = vmatprep.subr.bf16.mxu0 %v6386_v30  ;;  %v4393_v40 = vpop.f32.mrf.mxu0 }
 0x251   :  { %5535 = vmatprep.subr.bf16.mxu1 %v6384_v27 }
 0x253   :  { %5550 = vmatpush3.bf16.msra.mxu0 %v6387_v36 }
 0x254   :  { %5536 = vmatpush3.bf16.msra.mxu1 %v6385_v31  ;;  %5551 = vmatprep.subr.bf16.mxu0 %v6390_v39 }
 0x255   :  { %5537 = vmatprep.subr.bf16.mxu1 %v6388_v38 }
 0x257   :  { %5552 = vmatpush3.bf16.msra.mxu0 %v6391_v41 }
 0x258   :  { %5538 = vmatpush3.bf16.msra.mxu1 %v6389_v54  ;;  %5553 = vmatprep.subr.bf16.mxu0 %v6393_v26 }
 0x259   :  { %5567 = vmatprep.subr.bf16.mxu1 %v6392_v12 }
 0x25b   :  { %4767 = vmatmul.mubr.bf16.vlgmr.msra.gmra.mxu1 %v6670_v9  ;;  %5554 = vmatpush3.bf16.msra.mxu0 %v6395_v45  ;;  %v6406_v9 = vld [vmem:[#allocation7 + $0x7e8] ss:$12 sps:$4 sm:$0xff]  }
 0x25c   :  { %5568 = vmatpush3.bf16.msra.mxu1 %v6394_v37  ;;  %4848 = vmatprep.mubr.bf16.mxu1 %v6698_v28  ;;  %v6407_v28 = vld [vmem:[#allocation7 + $0x608] ss:$12 sps:$4 sm:$0xff]  }
 0x25d   :  { %5569 = vmatprep.subr.bf16.mxu1 %v6396_v46  ;;  %5555 = vmatprep.subr.bf16.mxu0 %v6397_v47 }
 0x25f   :  { %5556 = vmatpush3.bf16.msra.mxu0 %v6399_v49 }
 0x260   :  { %5570 = vmatpush3.bf16.msra.mxu1 %v6398_v48  ;;  %5557 = vmatprep.subr.bf16.mxu0 %v6401_v51 }
 0x261   :  { %5571 = vmatprep.subr.bf16.mxu1 %v6400_v50 }
 0x263   :  { %5558 = vmatpush3.bf16.msra.mxu0 %v6403_v53 }
 0x264   :  { %5572 = vmatpush3.bf16.msra.mxu1 %v6402_v58  ;;  %5559 = vmatprep.subr.bf16.mxu0 %v6405_v43 }
 0x265   :  { %5573 = vmatprep.subr.bf16.mxu1 %v6404_v56 }
 0x267   :  { %5560 = vmatpush3.bf16.msra.mxu0 %v6407_v28 }
 0x268   :  { %5574 = vmatpush3.bf16.msra.mxu1 %v6406_v9 }
 0x269   :  { %5575 = vmatprep.subr.bf16.mxu1 %v6408_v57 }
 0x26a   :  { %4808 = vmatmul.mubr.bf16.vlgmr.msra.gmra.mxu0 %v6689_v60  ;;  %v4432_v60 = vpop.f32.mrf.mxu1 }
 0x26c   :  { %5576 = vmatpush3.bf16.msra.mxu1 %v6409_v59  ;;  %v4434_v20 = vpop.f32.mrf.mxu1 }
 0x26d   :  { %5577 = vmatprep.subr.bf16.mxu1 %v6410_v24  ;;  %v4435_v21 = vadd.f32 %v4434_v20, %v4392_v15 }
 0x26e   :  { %v4436_v8 = vpop.f32.mrf.mxu1 }
 0x270   :  { %5578 = vmatpush3.bf16.msra.mxu1 %v6411_v33 }
 0x271   :  { %5579 = vmatprep.subr.bf16.mxu1 %v6412_v52 }
 0x274   :  { %5580 = vmatpush3.bf16.msra.mxu1 %v6413_v61 }
 0x275   :  { %5581 = vmatprep.subr.bf16.mxu1 %v6414_v2 }
 0x278   :  { %5582 = vmatpush3.bf16.msra.mxu1 %v6415_v7 }
 0x27b   :  { %4849 = vmatmul.mubr.bf16.vlgmr.msra.gmra.mxu1 %v6700_v32  ;;  %v2809_v32 = vrot.slane %v6718_v5, %v6599_v63 }
 0x27d   :  { %v4390_v11 = vadd.f32 %v4389_v0, %v2809_v32  ;;  %v4394_v16 = vadd.f32 %v4393_v40, %v2809_v32 }
 0x27f   :  { %v4433_v29 = vadd.f32 %v4432_v60, %v4390_v11  ;;  %v4437_v22 = vadd.f32 %v4436_v8, %v4394_v16 }
 0x28a   :  { %v4473_v13 = vpop.f32.mrf.mxu0 }
 0x28b   :  { %v4516_v55 = vpop.f32.mrf.mxu1  ;;  %v4474_v17 = vadd.f32 %v4473_v13, %v4431_v42 }
 0x28c   :  { %v4475_v6 = vpop.f32.mrf.mxu0 }
 0x28d   :  { %v4518_v14 = vpop.f32.mrf.mxu1  ;;  %v4476_v25 = vadd.f32 %v4475_v6, %v4433_v29  ;;  %v4517_v27 = vadd.f32 %v4516_v55, %v4474_v17 }
 0x28e   :  { %v4477_v62 = vpop.f32.mrf.mxu0 }
 0x28f   :  { %v4520_v18 = vpop.f32.mrf.mxu1  ;;  %v4478_v30 = vadd.f32 %v4477_v62, %v4435_v21  ;;  %v4519_v36 = vadd.f32 %v4518_v14, %v4476_v25 }
 0x290   :  { %v4479_v10 = vpop.f32.mrf.mxu0 }
 0x291   :  { %v4522_v31 = vpop.f32.mrf.mxu1  ;;  %v4480_v38 = vadd.f32 %v4479_v10, %v4437_v22  ;;  %v4521_v41 = vadd.f32 %v4520_v18, %v4478_v30 }
 0x293   :  { %v4523_v46 = vadd.f32 %v4522_v31, %v4480_v38 }
 0x2ca   :  { %v4559_v34 = vpop.f32.mrf.mxu0 }
 0x2cb   :  { %v4560_v39 = vadd.f32 %v4559_v34, %v4517_v27 }
 0x2cc   :  { %v4561_v19 = vpop.f32.mrf.mxu0 }
 0x2cd   :  { %v4562_v12 = vadd.f32 %v4561_v19, %v4519_v36 }
 0x2ce   :  { %v4563_v63 = vpop.f32.mrf.mxu0 }
 0x2cf   :  { %v4564_v47 = vadd.f32 %v4563_v63, %v4521_v41 }
 0x2d0   :  { %v4565_v37 = vpop.f32.mrf.mxu0 }
 0x2d1   :  { %v4566_v50 = vadd.f32 %v4565_v37, %v4523_v46 }
 0x2db   :  { %v4602_v54 = vpop.f32.mrf.mxu1 }
 0x2dc   :  { %v4603_v26 = vadd.f32 %v4602_v54, %v4560_v39 }
 0x2dd   :  { %v4604_v45 = vpop.f32.mrf.mxu1 }
 0x2de   :  { %4857 = vst [vmem:[#allocation8] sm:$0xff] %v4603_v26  ;;  %v4605_v48 = vadd.f32 %v4604_v45, %v4562_v12 }
 0x2df   :  { %v4606_v49 = vpop.f32.mrf.mxu1 }
 0x2e0   :  { %4858 = vst [vmem:[#allocation8 + $0x8] sm:$0xff] %v4605_v48  ;;  %v4607_v51 = vadd.f32 %v4606_v49, %v4564_v47 }
 0x2e1   :  { %v4608_v58 = vpop.f32.mrf.mxu1 }
 0x2e2   :  { %4860 = vst [vmem:[#allocation8 + $0x18] sm:$0xff] %v4607_v51  ;;  %v4609_v53 = vadd.f32 %v4608_v58, %v4566_v50 }
 0x2e4   :  { %4861 = vst [vmem:[#allocation8 + $0x20] sm:$0xff] %v4609_v53 }
 0x2ea   :  { %v5473_v56 = vpop.f32.mrf.mxu0 }
 0x2ec   :  { %v5474_v43 = vpop.f32.mrf.mxu0 }
 0x2ed   :  { %v5475_v40 = vadd.f32 %v5474_v43, %v5473_v56 }
 0x2ee   :  { %v5476_v9 = vpop.f32.mrf.mxu0 }
 0x2ef   :  { %v4646_v6 = vadd.f32 %v5475_v40, %v2813_v4 }
 0x2f0   :  { %v5477_v28 = vpop.f32.mrf.mxu0 }
 0x2f1   :  { %v5478_v23 = vadd.f32 %v5477_v28, %v5476_v9 }
 0x2f3   :  { %v4649_v11 = vadd.f32 %v5478_v23, %v2813_v4 }
 0x2fb   :  { %v5495_v57 = vpop.f32.mrf.mxu1 }
 0x2fd   :  { %v5496_v24 = vpop.f32.mrf.mxu1 }
 0x2fe   :  { %v5497_v13 = vadd.f32 %v5496_v24, %v5495_v57 }
 0x2ff   :  { %v5498_v52 = vpop.f32.mrf.mxu1 }
 0x300   :  { %v4687_v32 = vadd.f32 %v5497_v13, %v4646_v6 }
 0x301   :  { %v5499_v2 = vpop.f32.mrf.mxu1 }
 0x302   :  { %v5500_v55 = vadd.f32 %v5499_v2, %v5498_v52 }
 0x304   :  { %v4690_v16 = vadd.f32 %v5500_v55, %v4649_v11 }
 0x30a   :  { %v5517_v59 = vpop.f32.mrf.mxu0 }
 0x30c   :  { %v5518_v33 = vpop.f32.mrf.mxu0 }
 0x30d   :  { %v5519_v8 = vadd.f32 %v5518_v33, %v5517_v59 }
 0x30e   :  { %v5520_v61 = vpop.f32.mrf.mxu0 }
 0x30f   :  { %v4728_v14 = vadd.f32 %v5519_v8, %v4687_v32 }
 0x310   :  { %v5521_v7 = vpop.f32.mrf.mxu0 }
 0x311   :  { %v5522_v34 = vadd.f32 %v5521_v7, %v5520_v61 }
 0x313   :  { %v4731_v18 = vadd.f32 %v5522_v34, %v4690_v16 }
 0x31b   :  { %v5539_v44 = vpop.f32.mrf.mxu1 }
 0x31d   :  { %v5540_v3 = vpop.f32.mrf.mxu1 }
 0x31e   :  { %v5541_v1 = vadd.f32 %v5540_v3, %v5539_v44 }
 0x31f   :  { %v5542_v20 = vpop.f32.mrf.mxu1 }
 0x320   :  { %v4769_v35 = vadd.f32 %v5541_v1, %v4728_v14 }
 0x321   :  { %v5543_v10 = vpop.f32.mrf.mxu1 }
 0x322   :  { %v5544_v5 = vadd.f32 %v5543_v10, %v5542_v20 }
 0x324   :  { %v4772_v27 = vadd.f32 %v5544_v5, %v4731_v18 }
 0x32a   :  { %v5561_v0 = vpop.f32.mrf.mxu0 }
 0x32c   :  { %v5562_v60 = vpop.f32.mrf.mxu0 }
 0x32d   :  { %v5563_v42 = vadd.f32 %v5562_v60, %v5561_v0 }
 0x32e   :  { %v5564_v62 = vpop.f32.mrf.mxu0 }
 0x32f   :  { %v4810_v19 = vadd.f32 %v5563_v42, %v4769_v35 }
 0x330   :  { %v5565_v15 = vpop.f32.mrf.mxu0 }
 0x331   :  { %v5566_v21 = vadd.f32 %v5565_v15, %v5564_v62 }
 0x333   :  { %v4813_v63 = vadd.f32 %v5566_v21, %v4772_v27 }
 0x33b   :  { %v5583_v29 = vpop.f32.mrf.mxu1 }
 0x33d   :  { %v5584_v17 = vpop.f32.mrf.mxu1 }
 0x33e   :  { %v5585_v25 = vadd.f32 %v5584_v17, %v5583_v29 }
 0x33f   :  { %v5586_v22 = vpop.f32.mrf.mxu1 }
 0x340   :  { %v4851_v30 = vadd.f32 %v5585_v25, %v4810_v19 }
 0x341   :  { %v5587_v31 = vpop.f32.mrf.mxu1 }
 0x342   :  { %4859 = vst [vmem:[#allocation8 + $0x10] sm:$0xff] %v4851_v30  ;;  %v5588_v36 = vadd.f32 %v5587_v31, %v5586_v22 }
 0x344   :  { %v4854_v38 = vadd.f32 %v5588_v36, %v4813_v63 }
 0x346   :  { %4862 = vst [vmem:[#allocation8 + $0x28] sm:$0xff] %v4854_v38 }
 0x347   :  { %6488 = shalt.err (!%p6485_p5)
}
 0x348   :  { %4874 = dma.vmem_to_hbm [thread:$0]  %s4869_s18, 768, %s6737_s5, [#allocation4], %s6507_s28, %s6507_s28, %s6508_s29  }
 0x349   :  { %6501 = dma.done.wait [#allocation4], 768  }
 0x34a   :  { %6502 = vsyncadd [#allocation4], 4294966528 }
 0x34b   :  { %4878 = vsyncpa [#allocation3], 1 }
 0x34c   :  { %4879 = vsyncpa [#allocation6], 1 }
 0x34d   :  { %4880 = vsyncpa [#allocation4], 1 }

</bundles_post_ra>
